<compile_context>
chip_gen: v5e
topology: v5e:2x2
jax: 0.10.0
libtpu: 0.0.40
codegen_flags: <defaults>
</compile_context>

<pallas_src>
import functools

import jax
import jax.numpy as jnp
from jax.experimental import pallas as pl
from jax.experimental.pallas import tpu as pltpu

HI = jax.lax.Precision.HIGHEST   # match the f32 reference contraction accuracy


def _round_up(x, m):
  return (x + m - 1) // m * m


def euler_interaction_kernel(
    r_ref, p_ref, theta_ref,
    w_im_ref, b_im_ref, w_kron_ref, bias_lam_ref, bias_theta_ref,
    *rest, apply_norm):
  if apply_norm:
    (m_mean_ref, g_r_ref, b_r_ref, g_p_ref, b_p_ref, o_r_ref, o_p_ref) = rest
  else:
    (o_r_ref, o_p_ref) = rest

  TB = r_ref.shape[0]

  r = r_ref[...].astype(jnp.float32)        # (TB, inshape), lane-dense
  p = p_ref[...].astype(jnp.float32)
  theta = theta_ref[...].astype(jnp.float32)

  # ---- explicit (polar / Euler) magnitude, flat layout ----
  lam = 0.5 * jnp.log(r * r + p * p + 1e-8)                 # (TB, inshape)

  # ---- implicit (linear) path: one MXU matmul for r and p together ----
  rp = jnp.concatenate([r, p], axis=0)                      # (2*TB, inshape)
  rp_lin = jnp.dot(rp, w_im_ref[...], precision=HI,
                   preferred_element_type=jnp.float32)
  rp_lin = jnp.maximum(rp_lin + b_im_ref[...], 0.0)         # (2*TB, outshape)

  # ---- explicit contraction: lam/theta stacked vs Kronecker order weight ----
  lt = jnp.concatenate([lam, theta], axis=0)                # (2*TB, inshape)
  lt_o = jnp.dot(lt, w_kron_ref[...], precision=HI,
                 preferred_element_type=jnp.float32)        # (2*TB, outshape)
  lam_o = jnp.exp(lt_o[:TB] + bias_lam_ref[...])            # (TB, outshape)
  th_o = lt_o[TB:] + bias_theta_ref[...]

  o_r = rp_lin[:TB] + lam_o * jnp.cos(th_o)                 # (TB, outshape)
  o_p = rp_lin[TB:] + lam_o * jnp.sin(th_o)

  if apply_norm:
    # LayerNorm over each D-chunk done flat via a segmented-mean matmul
    # (m_mean = kron(I_Fout, ones(D,D)/D)): no (TB, F_out, D) relayout.
    o = jnp.concatenate([o_r, o_p], axis=0)                 # (2*TB, outshape)
    mu = jnp.dot(o, m_mean_ref[...], precision=HI,
                 preferred_element_type=jnp.float32)
    xc = o - mu
    var = jnp.dot(xc * xc, m_mean_ref[...], precision=HI,
                  preferred_element_type=jnp.float32)
    nrm = xc * jax.lax.rsqrt(var + 1e-5)                    # torch LN eps
    o_r = nrm[:TB] * g_r_ref[...] + b_r_ref[...]
    o_p = nrm[TB:] * g_p_ref[...] + b_p_ref[...]

  o_r_ref[...] = o_r.astype(o_r_ref.dtype)
  o_p_ref[...] = o_p.astype(o_p_ref.dtype)


def euler_interaction_layer(r, p, params, *, apply_norm=True):
  """Pallas wrapper. r, p: (B, F_in, D). Returns (o_r, o_p): (B, F_out, D)."""
  B, F_in, D = r.shape
  inter_orders = params['inter_orders']                     # (F_in, F_out)
  F_out = inter_orders.shape[1]
  inshape, outshape = F_in * D, F_out * D
  f32 = jnp.float32

  # ---- batch tiling: TB multiple of 8, capped so 2*TB = 256 MXU rows ----
  TB = min(128, _round_up(B, 8))
  B_pad = _round_up(B, TB)

  # ---- lane-dense activations; r/p streamed once each (theta at boundary) ----
  r_flat = r.reshape(B, inshape)
  p_flat = p.reshape(B, inshape)
  if B_pad != B:
    pad = ((0, B_pad - B), (0, 0))
    r_flat = jnp.pad(r_flat, pad)                           # zero rows are safe
    p_flat = jnp.pad(p_flat, pad)
  # TODO(synk): atan2 has no reliable Mosaic lowering; computed at the boundary.
  theta_flat = jnp.arctan2(p_flat, r_flat)

  # ---- parameter re-layout (plain-JAX glue) ----
  w_im_t = params['im_weight'].astype(f32).T                # (inshape, outshape)
  b_im = params['im_bias'].astype(f32).reshape(1, outshape)
  # Field contraction as a Kronecker-form lane-dense matmul weight.
  w_kron = jnp.kron(inter_orders.astype(f32), jnp.eye(D, dtype=f32))
  bias_lam = jnp.transpose(params['bias_lam'][0]).astype(f32).reshape(1, outshape)
  bias_theta = jnp.transpose(params['bias_theta'][0]).astype(f32).reshape(1, outshape)

  ins = [r_flat, p_flat, theta_flat,
         w_im_t, b_im, w_kron, bias_lam, bias_theta]

  grid = (B_pad // TB,)
  act_spec = pl.BlockSpec((TB, inshape), lambda i: (i, 0))
  out_spec = pl.BlockSpec((TB, outshape), lambda i: (i, 0))

  def wspec(shape):
    return pl.BlockSpec(shape, lambda i: (0, 0))

  in_specs = [act_spec, act_spec, act_spec,
              wspec((inshape, outshape)), wspec((1, outshape)),
              wspec((inshape, outshape)), wspec((1, outshape)),
              wspec((1, outshape))]

  if apply_norm:
    # Segmented-mean matrix for flat LayerNorm over each D-chunk.
    m_mean = jnp.kron(jnp.eye(F_out, dtype=f32), jnp.full((D, D), 1.0 / D, f32))
    g_r = jnp.tile(params['norm_r_weight'].astype(f32), F_out).reshape(1, outshape)
    b_r = jnp.tile(params['norm_r_bias'].astype(f32), F_out).reshape(1, outshape)
    g_p = jnp.tile(params['norm_p_weight'].astype(f32), F_out).reshape(1, outshape)
    b_p = jnp.tile(params['norm_p_bias'].astype(f32), F_out).reshape(1, outshape)
    ins += [m_mean, g_r, b_r, g_p, b_p]
    in_specs += [wspec((outshape, outshape)),
                 wspec((1, outshape)), wspec((1, outshape)),
                 wspec((1, outshape)), wspec((1, outshape))]

  # Explicit VMEM budget (double-buffered activation/output blocks + grid-
  # invariant weights + temporaries) so the kernel stays portable on v5e's
  # 16 MiB default scoped VMEM and v7x's 64 MiB physical VMEM.
  db = 2
  est = db * 4 * (3 * TB * inshape + 2 * TB * outshape)
  est += db * 4 * (2 * inshape * outshape + 9 * outshape)
  if apply_norm:
    est += db * 4 * outshape * outshape
  est += 4 * 16 * TB * max(inshape, outshape)
  vmem_limit = int(min(64 * 1024 * 1024, max(32 * 1024 * 1024, 2 * est)))

  flops = 2 * (2 * B_pad) * inshape * outshape * 2
  if apply_norm:
    flops += 2 * (2 * B_pad) * outshape * outshape * 2
  bytes_accessed = 4 * (3 * B_pad * inshape + 2 * B_pad * outshape
                        + 2 * inshape * outshape + 9 * outshape)
  if apply_norm:
    bytes_accessed += 4 * outshape * outshape
  cost = pl.CostEstimate(
      flops=int(flops),
      transcendentals=int(B_pad * (inshape + 3 * outshape)),
      bytes_accessed=int(bytes_accessed))

  kernel = functools.partial(euler_interaction_kernel, apply_norm=apply_norm)
  o_r, o_p = pl.pallas_call(
      kernel,
      out_shape=(jax.ShapeDtypeStruct((B_pad, outshape), r.dtype),
                 jax.ShapeDtypeStruct((B_pad, outshape), r.dtype)),
      grid=grid,
      in_specs=in_specs,
      out_specs=(out_spec, out_spec),
      compiler_params=pltpu.CompilerParams(
          dimension_semantics=("parallel",),        # v7x: shard batch on 2 TCs
          vmem_limit_bytes=vmem_limit),
      cost_estimate=cost,
  )(*ins)

  o_r = o_r[:B].reshape(B, F_out, D)
  o_p = o_p[:B].reshape(B, F_out, D)
  return o_r, o_p


def euler_interaction_ref(r, p, params, *, apply_norm=True):
  """Pure-JAX reference mirroring the PyTorch forward (eval mode)."""
  B, F_in, D = r.shape
  W = params['inter_orders']

  lam = r ** 2 + p ** 2 + 1e-8
  theta = jnp.arctan2(p, r)
  lam = 0.5 * jnp.log(lam.reshape(B, -1, D))
  theta = theta.reshape(B, -1, D)
  lam = jnp.swapaxes(lam, -2, -1)
  theta = jnp.swapaxes(theta, -2, -1)
  lam = jnp.einsum('bdf,fo->bdo', lam, W, precision=HI) + params['bias_lam']
  theta = jnp.einsum('bdf,fo->bdo', theta, W, precision=HI) + params['bias_theta']
  lam = jnp.exp(lam)
  lam = jnp.swapaxes(lam, -2, -1)
  theta = jnp.swapaxes(theta, -2, -1)

  r_f = r.reshape(B, -1)
  p_f = p.reshape(B, -1)
  r_l = jnp.maximum(
      jnp.dot(r_f, params['im_weight'].T, precision=HI) + params['im_bias'], 0.0)
  p_l = jnp.maximum(
      jnp.dot(p_f, params['im_weight'].T, precision=HI) + params['im_bias'], 0.0)
  r_l = r_l.reshape(B, -1, D)
  p_l = p_l.reshape(B, -1, D)

  o_r = r_l + lam * jnp.cos(theta)
  o_p = p_l + lam * jnp.sin(theta)

  if apply_norm:
    def ln(x, g, b):
      mu = jnp.mean(x, axis=-1, keepdims=True)
      var = jnp.mean((x - mu) ** 2, axis=-1, keepdims=True)
      return (x - mu) / jnp.sqrt(var + 1e-5) * g + b
    o_r = ln(o_r, params['norm_r_weight'], params['norm_r_bias'])
    o_p = ln(o_p, params['norm_p_weight'], params['norm_p_bias'])
  return o_r, o_p


if __name__ == "__main__":
  B, D = 4, 16                 # batch, feature_dim (embedding_dim)
  F_in = F_out = 8             # number of fields in / out
  inshape, outshape = F_in * D, F_out * D   # 128, 128 -> inter_orders = eye

  key = jax.random.PRNGKey(0)
  kr, kp, kw, kb, kbl, kbt = jax.random.split(key, 6)

  r = jax.random.normal(kr, (B, F_in, D), jnp.float32)
  p = jax.random.normal(kp, (B, F_in, D), jnp.float32)

  bound = 1.0 / (inshape ** 0.5)
  params = dict(
      inter_orders=jnp.eye(F_in, F_out, dtype=jnp.float32),   # inshape == outshape
      im_weight=jax.random.normal(kw, (outshape, inshape), jnp.float32) * 0.01,
      im_bias=jax.random.uniform(kb, (outshape,), jnp.float32, -bound, bound),
      bias_lam=jax.random.normal(kbl, (1, D, F_out), jnp.float32) * 0.01,
      bias_theta=jax.random.normal(kbt, (1, D, F_out), jnp.float32) * 0.01,
      norm_r_weight=jnp.ones((D,), jnp.float32),
      norm_r_bias=jnp.zeros((D,), jnp.float32),
      norm_p_weight=jnp.ones((D,), jnp.float32),
      norm_p_bias=jnp.zeros((D,), jnp.float32),
  )

  # With LayerNorm (apply_norm=True), as in the default module config.
  o_r, o_p = euler_interaction_layer(r, p, params, apply_norm=True)
  jax.block_until_ready((o_r, o_p))
  ref_r, ref_p = euler_interaction_ref(r, p, params, apply_norm=True)
  assert o_r.shape == (B, F_out, D) and o_p.shape == (B, F_out, D)
  assert jnp.allclose(o_r, ref_r, atol=1e-3, rtol=1e-3)
  assert jnp.allclose(o_p, ref_p, atol=1e-3, rtol=1e-3)

  # Also exercise the no-norm branch.
  o_r2, o_p2 = euler_interaction_layer(r, p, params, apply_norm=False)
  jax.block_until_ready((o_r2, o_p2))
  ref_r2, ref_p2 = euler_interaction_ref(r, p, params, apply_norm=False)
  assert jnp.allclose(o_r2, ref_r2, atol=1e-3, rtol=1e-3)
  assert jnp.allclose(o_p2, ref_p2, atol=1e-3, rtol=1e-3)

  print("KERNEL_OK")
</pallas_src>

<mosaic_0001>
module attributes {stable_mosaic.version = 11 : i64} {
  func.func @euler_interaction_kernel(%arg0: i32, %arg1: memref<8x128xf32, #tpu.memory_space<vmem>>, %arg2: memref<8x128xf32, #tpu.memory_space<vmem>>, %arg3: memref<8x128xf32, #tpu.memory_space<vmem>>, %arg4: memref<128x128xf32, #tpu.memory_space<vmem>>, %arg5: memref<1x128xf32, #tpu.memory_space<vmem>>, %arg6: memref<128x128xf32, #tpu.memory_space<vmem>>, %arg7: memref<1x128xf32, #tpu.memory_space<vmem>>, %arg8: memref<1x128xf32, #tpu.memory_space<vmem>>, %arg9: memref<128x128xf32, #tpu.memory_space<vmem>>, %arg10: memref<1x128xf32, #tpu.memory_space<vmem>>, %arg11: memref<1x128xf32, #tpu.memory_space<vmem>>, %arg12: memref<1x128xf32, #tpu.memory_space<vmem>>, %arg13: memref<1x128xf32, #tpu.memory_space<vmem>>, %arg14: memref<8x128xf32, #tpu.memory_space<vmem>>, %arg15: memref<8x128xf32, #tpu.memory_space<vmem>>) attributes {dimension_semantics = [#tpu.dimension_semantics<parallel>], iteration_bounds = array<i64: 1>, scalar_prefetch = 0 : i64, scratch_operands = 0 : i64, tpu.core_type = #tpu.core_type<tc>, window_params = [{transform_indices = @transform_0, window_bounds = array<i64: 8, 128>}, {transform_indices = @transform_1, window_bounds = array<i64: 8, 128>}, {transform_indices = @transform_2, window_bounds = array<i64: 8, 128>}, {pipeline_mode = #tpu.pipeline_mode<synchronous>, transform_indices = @transform_3, window_bounds = array<i64: 128, 128>}, {pipeline_mode = #tpu.pipeline_mode<synchronous>, transform_indices = @transform_4, window_bounds = array<i64: 1, 128>}, {pipeline_mode = #tpu.pipeline_mode<synchronous>, transform_indices = @transform_5, window_bounds = array<i64: 128, 128>}, {pipeline_mode = #tpu.pipeline_mode<synchronous>, transform_indices = @transform_6, window_bounds = array<i64: 1, 128>}, {pipeline_mode = #tpu.pipeline_mode<synchronous>, transform_indices = @transform_7, window_bounds = array<i64: 1, 128>}, {pipeline_mode = #tpu.pipeline_mode<synchronous>, transform_indices = @transform_8, window_bounds = array<i64: 128, 128>}, {pipeline_mode = #tpu.pipeline_mode<synchronous>, transform_indices = @transform_9, window_bounds = array<i64: 1, 128>}, {pipeline_mode = #tpu.pipeline_mode<synchronous>, transform_indices = @transform_10, window_bounds = array<i64: 1, 128>}, {pipeline_mode = #tpu.pipeline_mode<synchronous>, transform_indices = @transform_11, window_bounds = array<i64: 1, 128>}, {pipeline_mode = #tpu.pipeline_mode<synchronous>, transform_indices = @transform_12, window_bounds = array<i64: 1, 128>}, {transform_indices = @transform_13, window_bounds = array<i64: 8, 128>}, {transform_indices = @transform_14, window_bounds = array<i64: 8, 128>}]} {
    %c0 = arith.constant 0 : index
    %c0_0 = arith.constant 0 : index
    %0 = vector.load %arg1[%c0, %c0_0] : memref<8x128xf32, #tpu.memory_space<vmem>>, vector<8x128xf32>
    %c0_1 = arith.constant 0 : index
    %c0_2 = arith.constant 0 : index
    %1 = vector.load %arg2[%c0_1, %c0_2] : memref<8x128xf32, #tpu.memory_space<vmem>>, vector<8x128xf32>
    %c0_3 = arith.constant 0 : index
    %c0_4 = arith.constant 0 : index
    %2 = vector.load %arg3[%c0_3, %c0_4] : memref<8x128xf32, #tpu.memory_space<vmem>>, vector<8x128xf32>
    %3 = arith.mulf %0, %0 : vector<8x128xf32>
    %4 = arith.mulf %1, %1 : vector<8x128xf32>
    %5 = arith.addf %3, %4 : vector<8x128xf32>
    %cst = arith.constant 9.99999993E-9 : f32
    %6 = vector.broadcast %cst : f32 to vector<8x128xf32>
    %7 = arith.addf %5, %6 : vector<8x128xf32>
    %8 = math.log %7 : vector<8x128xf32>
    %cst_5 = arith.constant 5.000000e-01 : f32
    %9 = vector.broadcast %cst_5 : f32 to vector<8x128xf32>
    %10 = arith.mulf %9, %8 : vector<8x128xf32>
    %11 = tpu.concatenate %0, %1 in 0 : vector<8x128xf32>, vector<8x128xf32> -> vector<16x128xf32>
    %c0_6 = arith.constant 0 : index
    %c0_7 = arith.constant 0 : index
    %12 = vector.load %arg4[%c0_6, %c0_7] : memref<128x128xf32, #tpu.memory_space<vmem>>, vector<128x128xf32>
    %cst_8 = arith.constant dense<0.000000e+00> : vector<16x128xf32>
    %13 = tpu.matmul %11, %12, %cst_8 {dimension_numbers = #tpu.dot_dimension_numbers<[1], [0], [0], [1], [0, 0, 1, 1], [], []>, precision = #tpu.contract_precision<fp32>} : vector<16x128xf32>, vector<128x128xf32>, vector<16x128xf32> -> vector<16x128xf32>
    %c0_9 = arith.constant 0 : index
    %c0_10 = arith.constant 0 : index
    %14 = vector.load %arg5[%c0_9, %c0_10] : memref<1x128xf32, #tpu.memory_space<vmem>>, vector<1x128xf32>
    %15 = vector.broadcast %14 : vector<1x128xf32> to vector<16x128xf32>
    %16 = arith.addf %13, %15 : vector<16x128xf32>
    %cst_11 = arith.constant 0.000000e+00 : f32
    %17 = vector.broadcast %cst_11 : f32 to vector<16x128xf32>
    %18 = arith.maximumf %16, %17 : vector<16x128xf32>
    %19 = tpu.concatenate %10, %2 in 0 : vector<8x128xf32>, vector<8x128xf32> -> vector<16x128xf32>
    %c0_12 = arith.constant 0 : index
    %c0_13 = arith.constant 0 : index
    %20 = vector.load %arg6[%c0_12, %c0_13] : memref<128x128xf32, #tpu.memory_space<vmem>>, vector<128x128xf32>
    %cst_14 = arith.constant dense<0.000000e+00> : vector<16x128xf32>
    %21 = tpu.matmul %19, %20, %cst_14 {dimension_numbers = #tpu.dot_dimension_numbers<[1], [0], [0], [1], [0, 0, 1, 1], [], []>, precision = #tpu.contract_precision<fp32>} : vector<16x128xf32>, vector<128x128xf32>, vector<16x128xf32> -> vector<16x128xf32>
    %22 = vector.extract_strided_slice %21 {offsets = [0, 0], sizes = [8, 128], strides = [1, 1]} : vector<16x128xf32> to vector<8x128xf32>
    %c0_15 = arith.constant 0 : index
    %c0_16 = arith.constant 0 : index
    %23 = vector.load %arg7[%c0_15, %c0_16] : memref<1x128xf32, #tpu.memory_space<vmem>>, vector<1x128xf32>
    %24 = vector.broadcast %23 : vector<1x128xf32> to vector<8x128xf32>
    %25 = arith.addf %22, %24 : vector<8x128xf32>
    %26 = math.exp %25 : vector<8x128xf32>
    %27 = vector.extract_strided_slice %21 {offsets = [8, 0], sizes = [8, 128], strides = [1, 1]} : vector<16x128xf32> to vector<8x128xf32>
    %c0_17 = arith.constant 0 : index
    %c0_18 = arith.constant 0 : index
    %28 = vector.load %arg8[%c0_17, %c0_18] : memref<1x128xf32, #tpu.memory_space<vmem>>, vector<1x128xf32>
    %29 = vector.broadcast %28 : vector<1x128xf32> to vector<8x128xf32>
    %30 = arith.addf %27, %29 : vector<8x128xf32>
    %31 = vector.extract_strided_slice %18 {offsets = [0, 0], sizes = [8, 128], strides = [1, 1]} : vector<16x128xf32> to vector<8x128xf32>
    %32 = math.cos %30 : vector<8x128xf32>
    %33 = arith.mulf %26, %32 : vector<8x128xf32>
    %34 = arith.addf %31, %33 : vector<8x128xf32>
    %35 = vector.extract_strided_slice %18 {offsets = [8, 0], sizes = [8, 128], strides = [1, 1]} : vector<16x128xf32> to vector<8x128xf32>
    %36 = math.sin %30 : vector<8x128xf32>
    %37 = arith.mulf %26, %36 : vector<8x128xf32>
    %38 = arith.addf %35, %37 : vector<8x128xf32>
    %39 = tpu.concatenate %34, %38 in 0 : vector<8x128xf32>, vector<8x128xf32> -> vector<16x128xf32>
    %c0_19 = arith.constant 0 : index
    %c0_20 = arith.constant 0 : index
    %40 = vector.load %arg9[%c0_19, %c0_20] : memref<128x128xf32, #tpu.memory_space<vmem>>, vector<128x128xf32>
    %cst_21 = arith.constant dense<0.000000e+00> : vector<16x128xf32>
    %41 = tpu.matmul %39, %40, %cst_21 {dimension_numbers = #tpu.dot_dimension_numbers<[1], [0], [0], [1], [0, 0, 1, 1], [], []>, precision = #tpu.contract_precision<fp32>} : vector<16x128xf32>, vector<128x128xf32>, vector<16x128xf32> -> vector<16x128xf32>
    %42 = arith.subf %39, %41 : vector<16x128xf32>
    %43 = arith.mulf %42, %42 : vector<16x128xf32>
    %c0_22 = arith.constant 0 : index
    %c0_23 = arith.constant 0 : index
    %44 = vector.load %arg9[%c0_22, %c0_23] : memref<128x128xf32, #tpu.memory_space<vmem>>, vector<128x128xf32>
    %cst_24 = arith.constant dense<0.000000e+00> : vector<16x128xf32>
    %45 = tpu.matmul %43, %44, %cst_24 {dimension_numbers = #tpu.dot_dimension_numbers<[1], [0], [0], [1], [0, 0, 1, 1], [], []>, precision = #tpu.contract_precision<fp32>} : vector<16x128xf32>, vector<128x128xf32>, vector<16x128xf32> -> vector<16x128xf32>
    %cst_25 = arith.constant 9.99999974E-6 : f32
    %46 = vector.broadcast %cst_25 : f32 to vector<16x128xf32>
    %47 = arith.addf %45, %46 : vector<16x128xf32>
    %48 = math.rsqrt %47 : vector<16x128xf32>
    %49 = arith.mulf %42, %48 : vector<16x128xf32>
    %50 = vector.extract_strided_slice %49 {offsets = [0, 0], sizes = [8, 128], strides = [1, 1]} : vector<16x128xf32> to vector<8x128xf32>
    %c0_26 = arith.constant 0 : index
    %c0_27 = arith.constant 0 : index
    %51 = vector.load %arg10[%c0_26, %c0_27] : memref<1x128xf32, #tpu.memory_space<vmem>>, vector<1x128xf32>
    %52 = vector.broadcast %51 : vector<1x128xf32> to vector<8x128xf32>
    %53 = arith.mulf %50, %52 : vector<8x128xf32>
    %c0_28 = arith.constant 0 : index
    %c0_29 = arith.constant 0 : index
    %54 = vector.load %arg11[%c0_28, %c0_29] : memref<1x128xf32, #tpu.memory_space<vmem>>, vector<1x128xf32>
    %55 = vector.broadcast %54 : vector<1x128xf32> to vector<8x128xf32>
    %56 = arith.addf %53, %55 : vector<8x128xf32>
    %57 = vector.extract_strided_slice %49 {offsets = [8, 0], sizes = [8, 128], strides = [1, 1]} : vector<16x128xf32> to vector<8x128xf32>
    %c0_30 = arith.constant 0 : index
    %c0_31 = arith.constant 0 : index
    %58 = vector.load %arg12[%c0_30, %c0_31] : memref<1x128xf32, #tpu.memory_space<vmem>>, vector<1x128xf32>
    %59 = vector.broadcast %58 : vector<1x128xf32> to vector<8x128xf32>
    %60 = arith.mulf %57, %59 : vector<8x128xf32>
    %c0_32 = arith.constant 0 : index
    %c0_33 = arith.constant 0 : index
    %61 = vector.load %arg13[%c0_32, %c0_33] : memref<1x128xf32, #tpu.memory_space<vmem>>, vector<1x128xf32>
    %62 = vector.broadcast %61 : vector<1x128xf32> to vector<8x128xf32>
    %63 = arith.addf %60, %62 : vector<8x128xf32>
    %c0_34 = arith.constant 0 : index
    %c0_35 = arith.constant 0 : index
    %64 = vector.load %arg14[%c0_34, %c0_35] : memref<8x128xf32, #tpu.memory_space<vmem>>, vector<8x128xf32>
    tpu.vector_store %arg14[%c0_34, %c0_35], %56 {strides = array<i32>} : memref<8x128xf32, #tpu.memory_space<vmem>>, vector<8x128xf32>,
    %c0_36 = arith.constant 0 : index
    %c0_37 = arith.constant 0 : index
    %65 = vector.load %arg15[%c0_36, %c0_37] : memref<8x128xf32, #tpu.memory_space<vmem>>, vector<8x128xf32>
    tpu.vector_store %arg15[%c0_36, %c0_37], %63 {strides = array<i32>} : memref<8x128xf32, #tpu.memory_space<vmem>>, vector<8x128xf32>,
    return
  }
  func.func @transform_0(%arg0: i32) -> (i32, i32) {
    %c0_i32 = arith.constant 0 : i32
    %c0_i32_0 = arith.constant 0 : i32
    return %arg0, %c0_i32 : i32, i32
  }
  func.func @transform_1(%arg0: i32) -> (i32, i32) {
    %c0_i32 = arith.constant 0 : i32
    %c0_i32_0 = arith.constant 0 : i32
    return %arg0, %c0_i32 : i32, i32
  }
  func.func @transform_2(%arg0: i32) -> (i32, i32) {
    %c0_i32 = arith.constant 0 : i32
    %c0_i32_0 = arith.constant 0 : i32
    return %arg0, %c0_i32 : i32, i32
  }
  func.func @transform_3(%arg0: i32) -> (i32, i32) {
    %c0_i32 = arith.constant 0 : i32
    %c0_i32_0 = arith.constant 0 : i32
    %c0_i32_1 = arith.constant 0 : i32
    return %c0_i32, %c0_i32_0 : i32, i32
  }
  func.func @transform_4(%arg0: i32) -> (i32, i32) {
    %c0_i32 = arith.constant 0 : i32
    %c0_i32_0 = arith.constant 0 : i32
    %c0_i32_1 = arith.constant 0 : i32
    return %c0_i32, %c0_i32_0 : i32, i32
  }
  func.func @transform_5(%arg0: i32) -> (i32, i32) {
    %c0_i32 = arith.constant 0 : i32
    %c0_i32_0 = arith.constant 0 : i32
    %c0_i32_1 = arith.constant 0 : i32
    return %c0_i32, %c0_i32_0 : i32, i32
  }
  func.func @transform_6(%arg0: i32) -> (i32, i32) {
    %c0_i32 = arith.constant 0 : i32
    %c0_i32_0 = arith.constant 0 : i32
    %c0_i32_1 = arith.constant 0 : i32
    return %c0_i32, %c0_i32_0 : i32, i32
  }
  func.func @transform_7(%arg0: i32) -> (i32, i32) {
    %c0_i32 = arith.constant 0 : i32
    %c0_i32_0 = arith.constant 0 : i32
    %c0_i32_1 = arith.constant 0 : i32
    return %c0_i32, %c0_i32_0 : i32, i32
  }
  func.func @transform_8(%arg0: i32) -> (i32, i32) {
    %c0_i32 = arith.constant 0 : i32
    %c0_i32_0 = arith.constant 0 : i32
    %c0_i32_1 = arith.constant 0 : i32
    return %c0_i32, %c0_i32_0 : i32, i32
  }
  func.func @transform_9(%arg0: i32) -> (i32, i32) {
    %c0_i32 = arith.constant 0 : i32
    %c0_i32_0 = arith.constant 0 : i32
    %c0_i32_1 = arith.constant 0 : i32
    return %c0_i32, %c0_i32_0 : i32, i32
  }
  func.func @transform_10(%arg0: i32) -> (i32, i32) {
    %c0_i32 = arith.constant 0 : i32
    %c0_i32_0 = arith.constant 0 : i32
    %c0_i32_1 = arith.constant 0 : i32
    return %c0_i32, %c0_i32_0 : i32, i32
  }
  func.func @transform_11(%arg0: i32) -> (i32, i32) {
    %c0_i32 = arith.constant 0 : i32
    %c0_i32_0 = arith.constant 0 : i32
    %c0_i32_1 = arith.constant 0 : i32
    return %c0_i32, %c0_i32_0 : i32, i32
  }
  func.func @transform_12(%arg0: i32) -> (i32, i32) {
    %c0_i32 = arith.constant 0 : i32
    %c0_i32_0 = arith.constant 0 : i32
    %c0_i32_1 = arith.constant 0 : i32
    return %c0_i32, %c0_i32_0 : i32, i32
  }
  func.func @transform_13(%arg0: i32) -> (i32, i32) {
    %c0_i32 = arith.constant 0 : i32
    %c0_i32_0 = arith.constant 0 : i32
    return %arg0, %c0_i32 : i32, i32
  }
  func.func @transform_14(%arg0: i32) -> (i32, i32) {
    %c0_i32 = arith.constant 0 : i32
    %c0_i32_0 = arith.constant 0 : i32
    return %arg0, %c0_i32 : i32, i32
  }
}

</mosaic_0001>

<bundles_post_ra>
// kernel: tpu_custom_call.1
= control target key start
LH: loop header
LB: loop body
LE: loop exit
PB: predicated region body
PF: predicated region fallthrough
CT: control target
= control target key end

     0   :  { %20 = vsyncpa [#allocation3], 0  ;;  %s3494_s0 = inlined_call_operand.hbm [shape: f32[8,128], index: 0, kind: input, shape index: {}]   ;;  %s3495_s1 = inlined_call_operand.hbm [shape: f32[8,128], index: 1, kind: input, shape index: {}]   ;;  %s3496_s2 = inlined_call_operand.hbm [shape: f32[8,128], index: 2, kind: input, shape index: {}]   ;;  %s3497_s3 = inlined_call_operand.hbm [shape: f32[128,128], index: 3, kind: input, shape index: {}]   ;;  %s3498_s4 = inlined_call_operand.vmem [shape: f32[1,128], index: 4, kind: input, shape index: {}]   ;;  %s3499_s5 = inlined_call_operand.hbm [shape: f32[128,128], index: 5, kind: input, shape index: {}]   ;;  %s3500_s6 = inlined_call_operand.vmem [shape: f32[1,128], index: 6, kind: input, shape index: {}]   ;;  %s3501_s7 = inlined_call_operand.vmem [shape: f32[1,128], index: 7, kind: input, shape index: {}]   ;;  %s3502_s8 = inlined_call_operand.hbm [shape: f32[128,128], index: 8, kind: input, shape index: {}]   ;;  %s3503_s9 = inlined_call_operand.vmem [shape: f32[1,128], index: 9, kind: input, shape index: {}]   ;;  %s3504_s10 = inlined_call_operand.vmem [shape: f32[1,128], index: 10, kind: input, shape index: {}]   ;;  %s3505_s11 = inlined_call_operand.vmem [shape: f32[1,128], index: 11, kind: input, shape index: {}]   ;;  %s3506_s12 = inlined_call_operand.vmem [shape: f32[1,128], index: 12, kind: input, shape index: {}]   ;;  %s3507_s13 = inlined_call_operand.hbm [shape: f32[8,128], index: 13, kind: output, shape index: {0}]   ;;  %s3508_s14 = inlined_call_operand.hbm [shape: f32[8,128], index: 14, kind: output, shape index: {1}]  }
   0x1   :  { %21 = vsyncpa [#allocation6], 0 }
   0x2   :  { %22 = vsyncpa [#allocation9], 0 }
   0x3   :  { %23 = vsyncpa [#allocation12], 0 }
   0x4   :  { %24 = vsyncpa [#allocation4], 0  ;;  %s42_s15 = sshll.u32 %s3495_s1, 4  ;;  %s43_s15 = int_to_ptr.hbm [resolvable:$true] %s42_s15 }
   0x5   :  { %25 = vsyncpa [#allocation15], 0  ;;  %s2339_s16 = smov [#allocation5]   ;;  %s63_s20 = sshll.u32 %s3497_s3, 4  ;;  %s64_s20 = int_to_ptr.hbm [resolvable:$true] %s63_s20 }
   0x6   :  { %s44_s17 = sshll.u32 %s2339_s16, 4  ;;  %s2340_s21 = smov [#allocation8]   ;;  %s45_s17 = int_to_ptr.vmem [resolvable:$true] %s44_s17 }
   0x7   :  { %47 = dma.hbm_to_vmem [thread:$0]  %s43_s15, 128, %s45_s17, [#allocation6]  }
   0x8   :  { %s65_s22 = sshll.u32 %s2340_s21, 4  ;;  %s2341_s23 = smov 128   ;;  %s66_s22 = int_to_ptr.vmem [resolvable:$true] %s65_s22 }
   0x9   :  { %s2342_s24 = smov 8   ;;  %s31_s1 = sshll.u32 %s3494_s0, 4  ;;  %s32_s1 = int_to_ptr.hbm [resolvable:$true] %s31_s1 }
   0xa   :  { %71 = dma.hbm_to_vmem [thread:$0]  %s64_s20, 2048, %s66_s22, [#allocation9], %s2341_s23, %s2341_s23, %s2342_s24  }
   0xb   :  { %s2343_s27 = smov [#allocation2]   ;;  %s53_s3 = sshll.u32 %s3496_s2, 4  ;;  %s54_s3 = int_to_ptr.hbm [resolvable:$true] %s53_s3 }
   0xc   :  { %s33_s28 = sshll.u32 %s2343_s27, 4  ;;  %s2344_s15 = smov [#allocation7]   ;;  %s34_s28 = int_to_ptr.vmem [resolvable:$true] %s33_s28 }
   0xd   :  { %36 = dma.hbm_to_vmem [thread:$0]  %s32_s1, 128, %s34_s28, [#allocation3]  }
   0xe   :  { %s55_s16 = sshll.u32 %s2344_s15, 4  ;;  %s78_s19 = sshll.u32 %s3499_s5, 4  ;;  %s56_s16 = int_to_ptr.vmem [resolvable:$true] %s55_s16  ;;  %s79_s19 = int_to_ptr.hbm [resolvable:$true] %s78_s19 }
   0xf   :  { %58 = dma.hbm_to_vmem [thread:$0]  %s54_s3, 128, %s56_s16, [#allocation6]  }
  0x10   :  { %s95_s21 = sshll.u32 %s3502_s8, 4  ;;  %s2345_s22 = smov [#allocation10]   ;;  %s96_s21 = int_to_ptr.hbm [resolvable:$true] %s95_s21 }
  0x11   :  { %s80_s25 = sshll.u32 %s2345_s22, 4  ;;  %s2346_s2 = smov [#allocation11]   ;;  %s81_s25 = int_to_ptr.vmem [resolvable:$true] %s80_s25 }
  0x12   :  { %86 = dma.hbm_to_vmem [thread:$0]  %s79_s19, 2048, %s81_s25, [#allocation9], %s2341_s23, %s2341_s23, %s2342_s24  }
  0x13   :  { %s97_s26 = sshll.u32 %s2346_s2, 4  ;;  %s98_s26 = int_to_ptr.vmem [resolvable:$true] %s97_s26 }
  0x14   :  { %103 = dma.hbm_to_vmem [thread:$0]  %s96_s21, 2048, %s98_s26, [#allocation12], %s2341_s23, %s2341_s23, %s2342_s24  }
  0x15   :  { %2327 = dma.done.wait [#allocation3], 128  }
  0x16   :  { %2328 = vsyncadd [#allocation3], 4294967168 }
  0x17   :  { %2329 = dma.done.wait [#allocation6], 256  }
  0x18   :  { %2330 = vsyncadd [#allocation6], 4294967040 }
  0x19   :  { %2331 = dma.done.wait [#allocation9], 4096  }
  0x1a   :  { %2332 = vsyncadd [#allocation9], 4294963200 }
  0x1b   :  { %2333 = dma.done.wait [#allocation12], 2048  }
  0x1c   :  { %2334 = vsyncadd [#allocation12], 4294965248  ;;  %v161_v0 = vld [vmem:[#allocation8 + $0x78] sm:$0xff]  ;;  %v160_v1 = vld [vmem:[#allocation8 + $0x70] sm:$0xff]  ;;  %s2354_s29 = smov [#allocation13]   ;;  %s2068_s16 = sshll.u32 %s3507_s13, 4  ;;  %s2069_s16 = int_to_ptr.hbm [resolvable:$true] %s2068_s16 }
  0x1d   :  { %v159_v2 = vld [vmem:[#allocation8 + $0x68] sm:$0xff]  ;;  %v2449_v3 = vand.u32 4294901760, %v161_v0  ;;  %v2451_v4 = vand.u32 4294901760, %v160_v1  ;;  %v158_v6 = vld [vmem:[#allocation8 + $0x60] sm:$0xff]  ;;  %v157_v7 = vld [vmem:[#allocation8 + $0x58] sm:$0xff]  ;;  %s2066_s30 = sshll.u32 %s2354_s29, 4  ;;  %s2067_s30 = int_to_ptr.vmem [resolvable:$true] %s2066_s30 }
  0x1e   :  { %v2453_v5 = vand.u32 4294901760, %v159_v2  ;;  %v156_v8 = vld [vmem:[#allocation8 + $0x50] sm:$0xff]  ;;  %v2455_v9 = vand.u32 4294901760, %v158_v6  ;;  %v2457_v10 = vand.u32 4294901760, %v157_v7  ;;  %v155_v12 = vld [vmem:[#allocation8 + $0x48] sm:$0xff]  ;;  %v154_v13 = vld [vmem:[#allocation8 + $0x40] sm:$0xff] }
  0x1f   :  { %v2459_v11 = vand.u32 4294901760, %v156_v8  ;;  %167 = vmatpush.msra.mxu0 %v2449_v3  ;;  %v2463_v14 = vsub.f32 %v161_v0, %v2449_v3  ;;  %v2466_v15 = vsub.f32 %v160_v1, %v2451_v4  ;;  %380 = vmatpush.msra.mxu3 %v2449_v3  ;;  %v2472_v17 = vand.u32 4294901760, %v155_v12  ;;  %v153_v18 = vld [vmem:[#allocation8 + $0x38] sm:$0xff]  ;;  %v152_v26 = vld [vmem:[#allocation8 + $0x30] sm:$0xff]  ;;  %v151_v34 = vld [vmem:[#allocation8 + $0x28] sm:$0xff]  ;;  %s2355_s18 = smov [#allocation14]  }
  0x20   :  { %v2470_v16 = vsub.f32 %v159_v2, %v2453_v5  ;;  %v2475_v19 = vsub.f32 %v158_v6, %v2455_v9  ;;  %v2478_v20 = vsub.f32 %v157_v7, %v2457_v10  ;;  %v2480_v21 = vand.u32 4294901760, %v154_v13  ;;  %v150_v42 = vld [vmem:[#allocation8 + $0x20] sm:$0xff]  ;;  %v149_v48 = vld [vmem:[#allocation8 + $0x18] sm:$0xff]  ;;  %v148_v54 = vld [vmem:[#allocation8 + $0x10] sm:$0xff]  ;;  %s2077_s19 = sshll.u32 %s2355_s18, 4  ;;  %s2079_s21 = sshll.u32 %s3508_s14, 4  ;;  %s2078_s19 = int_to_ptr.vmem [resolvable:$true] %s2077_s19  ;;  %s2080_s21 = int_to_ptr.hbm [resolvable:$true] %s2079_s21 }
  0x21   :  { %169 = vmatpush.msra.mxu0 %v2451_v4  ;;  %322 = vmatpush.msra.mxu2 %v2463_v14  ;;  %v217_v22 = vand.u32 4294901760, %v2463_v14  ;;  %v3523_v23 = vand.u32 4294901760, %v2466_v15  ;;  %v2488_v25 = vsub.f32 %v156_v8, %v2459_v11  ;;  %v2492_v28 = vand.u32 4294901760, %v153_v18  ;;  %v555_v59 = vld [vmem:[#allocation10 + $0x78] sm:$0xff]  ;;  %v147_v61 = vld [vmem:[#allocation8 + $0x8] sm:$0xff]  ;;  %v554_v2 = vld [vmem:[#allocation10 + $0x70] sm:$0xff] }
  0x22   :  { %v3522_v24 = vand.u32 4294901760, %v2470_v16  ;;  %382 = vmatpush.msra.mxu3 %v2451_v4  ;;  %v3520_v27 = vand.u32 4294901760, %v2475_v19  ;;  %v2495_v29 = vsub.f32 %v155_v12, %v2472_v17  ;;  %v3518_v33 = vand.u32 4294901760, %v2478_v20  ;;  %v146_v7 = vld [vmem:[#allocation8] sm:$0xff] }
  0x23   :  { %171 = vmatpush.msra.mxu0 %v2453_v5  ;;  %325 = vmatpush.msra.mxu2 %v2466_v15  ;;  %v218_v30 = vsub.f32 %v2463_v14, %v217_v22  ;;  %v224_v31 = vsub.f32 %v2466_v15, %v3523_v23  ;;  %v2510_v35 = vand.u32 4294901760, %v152_v26  ;;  %v2513_v36 = vsub.f32 %v154_v13, %v2480_v21  ;;  %v546_v23 = vld [vmem:[#allocation10 + $0x30] sm:$0xff] }
  0x24   :  { %v230_v32 = vsub.f32 %v2470_v16, %v3522_v24  ;;  %384 = vmatpush.msra.mxu3 %v2453_v5  ;;  %v236_v39 = vsub.f32 %v2475_v19, %v3520_v27  ;;  %v3516_v40 = vand.u32 4294901760, %v2488_v25  ;;  %v2522_v41 = vand.u32 4294901760, %v151_v34  ;;  %v547_v27 = vld [vmem:[#allocation10 + $0x38] sm:$0xff] }
  0x25   :  { %173 = vmatpush.msra.mxu0 %v2455_v9  ;;  %v219_v37 = vand.u32 4294901760, %v218_v30  ;;  %328 = vmatpush.msra.mxu2 %v2470_v16  ;;  %v225_v38 = vand.u32 4294901760, %v224_v31  ;;  %v242_v44 = vsub.f32 %v2478_v20, %v3518_v33  ;;  %v3515_v45 = vand.u32 4294901760, %v2495_v29 }
  0x26   :  { %386 = vmatpush.msra.mxu3 %v2455_v9  ;;  %v231_v43 = vand.u32 4294901760, %v230_v32  ;;  %v2530_v46 = vsub.f32 %v153_v18, %v2492_v28  ;;  %v3514_v47 = vand.u32 4294901760, %v2513_v36  ;;  %v237_v49 = vand.u32 4294901760, %v236_v39  ;;  %v553_v32 = vld [vmem:[#allocation10 + $0x68] sm:$0xff] }
  0x27   :  { %175 = vmatpush.msra.mxu0 %v2457_v10  ;;  %220 = vmatpush.msra.mxu1 %v219_v37  ;;  %v248_v50 = vsub.f32 %v2488_v25, %v3516_v40  ;;  %v2539_v51 = vand.u32 4294901760, %v150_v42  ;;  %v2542_v52 = vsub.f32 %v152_v26, %v2510_v35  ;;  %v2547_v53 = vsub.f32 %v151_v34, %v2522_v41  ;;  %v548_v40 = vld [vmem:[#allocation10 + $0x40] sm:$0xff] }
  0x28   :  { %331 = vmatpush.msra.mxu2 %v2475_v19  ;;  %388 = vmatpush.msra.mxu3 %v2457_v10  ;;  %v243_v55 = vand.u32 4294901760, %v242_v44  ;;  %v254_v56 = vsub.f32 %v2495_v29, %v3515_v45  ;;  %v2553_v57 = vand.u32 4294901760, %v149_v48  ;;  %v3512_v58 = vand.u32 4294901760, %v2530_v46 }
  0x29   :  { %177 = vmatpush.msra.mxu0 %v2459_v11  ;;  %226 = vmatpush.msra.mxu1 %v225_v38  ;;  %v260_v60 = vsub.f32 %v2513_v36, %v3514_v47  ;;  %v249_v62 = vand.u32 4294901760, %v248_v50  ;;  %v2562_v63 = vand.u32 4294901760, %v148_v54  ;;  %v3511_v0 = vand.u32 4294901760, %v2542_v52 }
  0x2a   :  { %334 = vmatpush.msra.mxu2 %v2478_v20  ;;  %390 = vmatpush.msra.mxu3 %v2459_v11  ;;  %v2566_v1 = vsub.f32 %v150_v42, %v2539_v51  ;;  %v3509_v6 = vand.u32 4294901760, %v2547_v53  ;;  %v2571_v8 = vand.u32 4294901760, %v555_v59  ;;  %v255_v12 = vand.u32 4294901760, %v254_v56  ;;  %v552_v42 = vld [vmem:[#allocation10 + $0x60] sm:$0xff] }
  0x2b   :  { %179 = vmatpush.msra.mxu0 %v2472_v17  ;;  %232 = vmatpush.msra.mxu1 %v231_v43  ;;  %v266_v13 = vsub.f32 %v2530_v46, %v3512_v58  ;;  %v2577_v18 = vand.u32 4294901760, %v147_v61  ;;  %v2580_v26 = vsub.f32 %v149_v48, %v2553_v57  ;;  %v261_v30 = vand.u32 4294901760, %v260_v60 }
  0x2c   :  { %337 = vmatpush.msra.mxu2 %v2488_v25  ;;  %392 = vmatpush.msra.mxu3 %v2472_v17  ;;  %3551 = vst [vmem:[#allocation22_spill] sm:$0xff] %v2571_v8  ;;  %v2584_v31 = vand.u32 4294901760, %v554_v2  ;;  %v272_v34 = vsub.f32 %v2542_v52, %v3511_v0  ;;  %v2590_v37 = vand.u32 4294901760, %v146_v7  ;;  %v3510_v38 = vand.u32 4294901760, %v2566_v1  ;;  %v549_v0 = vld [vmem:[#allocation10 + $0x48] sm:$0xff] }
  0x2d   :  { %181 = vmatpush.msra.mxu0 %v2480_v21  ;;  %238 = vmatpush.msra.mxu1 %v237_v49  ;;  %v2594_v39 = vsub.f32 %v148_v54, %v2562_v63  ;;  %v278_v43 = vsub.f32 %v2547_v53, %v3509_v6  ;;  %v2602_v44 = vsub.f32 %v555_v59, %v2571_v8  ;;  %v267_v48 = vand.u32 4294901760, %v266_v13  ;;  %v551_v59 = vld [vmem:[#allocation10 + $0x58] sm:$0xff]  ;;  %v550_v13 = vld [vmem:[#allocation10 + $0x50] sm:$0xff] }
  0x2e   :  { %340 = vmatpush.msra.mxu2 %v2495_v29  ;;  %394 = vmatpush.msra.mxu3 %v2480_v21  ;;  %3552 = vst [vmem:[#allocation23_spill] sm:$0xff] %v2584_v31  ;;  %v3513_v49 = vand.u32 4294901760, %v2580_v26  ;;  %v2607_v50 = vsub.f32 %v147_v61, %v2577_v18  ;;  %v2609_v54 = vand.u32 4294901760, %v553_v32  ;;  %v2616_v56 = vand.u32 4294901760, %v552_v42 }
  0x2f   :  { %183 = vmatpush.msra.mxu0 %v2492_v28  ;;  %244 = vmatpush.msra.mxu1 %v243_v55  ;;  %3553 = vst [vmem:[#allocation24_spill] sm:$0xff] %v2590_v37  ;;  %v2614_v55 = vsub.f32 %v554_v2, %v2584_v31  ;;  %v273_v60 = vand.u32 4294901760, %v272_v34  ;;  %v284_v61 = vsub.f32 %v2566_v1, %v3510_v38  ;;  %v279_v2 = vand.u32 4294901760, %v278_v43 }
  0x30   :  { %343 = vmatpush.msra.mxu2 %v2513_v36  ;;  %396 = vmatpush.msra.mxu3 %v2492_v28  ;;  %3554 = vst [vmem:[#allocation25_spill] sm:$0xff] %v2609_v54  ;;  %v3519_v6 = vand.u32 4294901760, %v2602_v44  ;;  %v3521_v34 = vand.u32 4294901760, %v2607_v50  ;;  %v2637_v38 = vand.u32 4294901760, %v551_v59  ;;  %v2645_v58 = vand.u32 4294901760, %v550_v13 }
  0x31   :  { %185 = vmatpush.msra.mxu0 %v2510_v35  ;;  %250 = vmatpush.msra.mxu1 %v249_v62  ;;  %v3517_v62 = vand.u32 4294901760, %v2594_v39  ;;  %v3524_v43 = vand.u32 4294901760, %v2614_v55  ;;  %v2657_v45 = vand.u32 4294901760, %v549_v0  ;;  %v2680_v24 = vand.u32 4294901760, %v548_v40 }
  0x32   :  { %346 = vmatpush.msra.mxu2 %v2530_v46  ;;  %398 = vmatpush.msra.mxu3 %v2510_v35  ;;  %v2665_v33 = vsub.f32 %v551_v59, %v2637_v38  ;;  %v3555_v14 = vand.u32 4294901760, %v2466_v15  ;;  %v3557_v15 = vand.u32 4294901760, %v2470_v16  ;;  %v3559_v16 = vand.u32 4294901760, %v2475_v19 }
  0x33   :  { %187 = vmatpush.msra.mxu0 %v2522_v41  ;;  %256 = vmatpush.msra.mxu1 %v255_v12  ;;  %v2624_v12 = vsub.f32 %v146_v7, %v2590_v37  ;;  %v2635_v7 = vsub.f32 %v553_v32, %v2609_v54  ;;  %v296_v32 = vsub.f32 %v2594_v39, %v3517_v62 }
  0x34   :  { %349 = vmatpush.msra.mxu2 %v2542_v52  ;;  %400 = vmatpush.msra.mxu3 %v2522_v41 }
  0x35   :  { %189 = vmatpush.msra.mxu0 %v2539_v51  ;;  %262 = vmatpush.msra.mxu1 %v261_v30  ;;  %v290_v30 = vsub.f32 %v2580_v26, %v3513_v49  ;;  %v285_v49 = vand.u32 4294901760, %v284_v61  ;;  %v3525_v47 = vand.u32 4294901760, %v2624_v12  ;;  %v302_v61 = vsub.f32 %v2607_v50, %v3521_v34 }
  0x36   :  { %352 = vmatpush.msra.mxu2 %v2547_v53  ;;  %402 = vmatpush.msra.mxu3 %v2539_v51  ;;  %v3527_v62 = vand.u32 4294901760, %v2635_v7  ;;  %v297_v34 = vand.u32 4294901760, %v296_v32  ;;  %v2706_v32 = vsub.f32 %v548_v40, %v2680_v24 }
  0x37   :  { %191 = vmatpush.msra.mxu0 %v2553_v57  ;;  %268 = vmatpush.msra.mxu1 %v267_v48  ;;  %v2643_v48 = vsub.f32 %v552_v42, %v2616_v56  ;;  %v608_v42 = vsub.f32 %v2602_v44, %v3519_v6  ;;  %v614_v6 = vsub.f32 %v2614_v55, %v3524_v43 }
  0x38   :  { %355 = vmatpush.msra.mxu2 %v2566_v1  ;;  %404 = vmatpush.msra.mxu3 %v2553_v57  ;;  %v308_v59 = vsub.f32 %v2624_v12, %v3525_v47  ;;  %v2693_v47 = vand.u32 4294901760, %v547_v27 }
  0x39   :  { %193 = vmatpush.msra.mxu0 %v2562_v63  ;;  %274 = vmatpush.msra.mxu1 %v273_v60  ;;  %v291_v60 = vand.u32 4294901760, %v290_v30  ;;  %v2674_v30 = vsub.f32 %v550_v13, %v2645_v58  ;;  %v609_v43 = vand.u32 4294901760, %v608_v42  ;;  %v2686_v13 = vsub.f32 %v549_v0, %v2657_v45 }
  0x3a   :  { %358 = vmatpush.msra.mxu2 %v2580_v26  ;;  %406 = vmatpush.msra.mxu3 %v2562_v63  ;;  %v3556_v0 = vand.u32 4294901760, %v2643_v48  ;;  %v2718_v40 = vsub.f32 %v547_v27, %v2693_v47 }
  0x3b   :  { %195 = vmatpush.msra.mxu0 %v2577_v18  ;;  %280 = vmatpush.msra.mxu1 %v279_v2  ;;  %v303_v2 = vand.u32 4294901760, %v302_v61  ;;  %v2702_v61 = vand.u32 4294901760, %v546_v23 }
  0x3c   :  { %361 = vmatpush.msra.mxu2 %v2594_v39  ;;  %408 = vmatpush.msra.mxu3 %v2577_v18  ;;  %v626_v42 = vsub.f32 %v2643_v48, %v3556_v0  ;;  %v2711_v0 = vld [vmem:[#allocation5] sm:$0xff] }
  0x3d   :  { %197 = vmatpush.msra.mxu0 %v2590_v37  ;;  %286 = vmatpush.msra.mxu1 %v285_v49  ;;  %v620_v49 = vsub.f32 %v2635_v7, %v3527_v62  ;;  %v309_v62 = vand.u32 4294901760, %v308_v59  ;;  %v140_v19 = vmul.f32 %v2711_v0, %v2711_v0 }
  0x3e   :  { %364 = vmatpush.msra.mxu2 %v2607_v50  ;;  %410 = vmatpush.msra.mxu3 %v2590_v37  ;;  %v545_v37 = vld [vmem:[#allocation10 + $0x28] sm:$0xff] }
  0x3f   :  { %427 = vmatpush.msrb.mxu0 %v217_v22  ;;  %292 = vmatpush.msra.mxu1 %v291_v60  ;;  %v615_v22 = vand.u32 4294901760, %v614_v6  ;;  %v621_v60 = vand.u32 4294901760, %v620_v49  ;;  %v2728_v49 = vsub.f32 %v546_v23, %v2702_v61  ;;  %v544_v6 = vld [vmem:[#allocation10 + $0x20] sm:$0xff]  ;;  %v3562_v23 = vand.u32 4294901760, %v2686_v13 }
  0x40   :  { %367 = vmatpush.msra.mxu2 %v2624_v12  ;;  %610 = vmatpush.msrb.mxu3 %v609_v43  ;;  %v627_v43 = vand.u32 4294901760, %v626_v42  ;;  %v2744_v27 = vand.u32 4294901760, %v544_v6 }
  0x41   :  { %431 = vmatpush.msrb.mxu0 %v3555_v14  ;;  %298 = vmatpush.msra.mxu1 %v297_v34  ;;  %v136_v14 = vld [vmem:[#allocation2] sm:$0xff]  ;;  %v3558_v34 = vand.u32 4294901760, %v2665_v33  ;;  %v644_v42 = vsub.f32 %v2686_v13, %v3562_v23  ;;  %v542_v23 = vld [vmem:[#allocation10 + $0x10] sm:$0xff] }
  0x42   :  { %557 = vmatpush.msrb.mxu2 %v2571_v8  ;;  %v2720_v8 = vand.u32 4294901760, %v545_v37  ;;  %616 = vmatpush.msrb.mxu3 %v615_v22  ;;  %v3561_v22 = vand.u32 4294901760, %v2478_v20  ;;  %v3563_v20 = vand.u32 4294901760, %v2488_v25 }
  0x43   :  { %435 = vmatpush.msrb.mxu0 %v3557_v15  ;;  %304 = vmatpush.msra.mxu1 %v303_v2  ;;  %v632_v59 = vsub.f32 %v2665_v33, %v3558_v34  ;;  %v3560_v15 = vand.u32 4294901760, %v2674_v30  ;;  %v139_v34 = vmul.f32 %v136_v14, %v136_v14 }
  0x44   :  { %559 = vmatpush.msrb.mxu2 %v2584_v31  ;;  %v2732_v31 = vand.u32 4294901760, %v136_v14  ;;  %622 = vmatpush.msrb.mxu3 %v621_v60  ;;  %v3564_v60 = vand.u32 4294901760, %v2706_v32 }
  0x45   :  { %439 = vmatpush.msrb.mxu0 %v3559_v16  ;;  %v638_v2 = vsub.f32 %v2674_v30, %v3560_v15  ;;  %310 = vmatpush.msra.mxu1 %v309_v62  ;;  %v543_v62 = vld [vmem:[#allocation10 + $0x18] sm:$0xff]  ;;  %v633_v16 = vand.u32 4294901760, %v632_v59  ;;  %v141_v25 = vadd.f32 %v140_v19, %v139_v34  ;;  %v541_v34 = vld [vmem:[#allocation10 + $0x8] sm:$0xff] }
  0x46   :  { %561 = vmatpush.msrb.mxu2 %v2609_v54  ;;  %v2747_v54 = vsub.f32 %v545_v37, %v2720_v8  ;;  %628 = vmatpush.msrb.mxu3 %v627_v43  ;;  %v650_v59 = vsub.f32 %v2706_v32, %v3564_v60  ;;  %v2758_v15 = vsub.f32 %v136_v14, %v2732_v31  ;;  %v2760_v37 = vand.u32 4294901760, %v543_v62 }
  0x47   :  { %443 = vmatpush.msrb.mxu0 %v3561_v22  ;;  %498 = vmatpush.msrb.mxu1 %v2449_v3  ;;  %v639_v3 = vand.u32 4294901760, %v638_v2  ;;  %v3566_v43 = vand.u32 4294901760, %v2718_v40  ;;  %v2771_v14 = vsub.f32 %v544_v6, %v2744_v27  ;;  %v2773_v22 = vand.u32 4294901760, %v542_v23 }
  0x48   :  { %563 = vmatpush.msrb.mxu2 %v2616_v56  ;;  %634 = vmatpush.msrb.mxu3 %v633_v16  ;;  %v667_v60 = vand.u32 4294901760, %v2747_v54  ;;  %v200_v16 = vand.u32 4294901760, %v2758_v15  ;;  %v2784_v6 = vsub.f32 %v543_v62, %v2760_v37 }
  0x49   :  { %447 = vmatpush.msrb.mxu0 %v3563_v20  ;;  %500 = vmatpush.msrb.mxu1 %v2451_v4  ;;  %v3565_v20 = vand.u32 4294901760, %v2495_v29  ;;  %v645_v4 = vand.u32 4294901760, %v644_v42  ;;  %v656_v2 = vsub.f32 %v2718_v40, %v3566_v43  ;;  %v3567_v29 = vand.u32 4294901760, %v2513_v36  ;;  %v540_v36 = vld [vmem:[#allocation10] sm:$0xff] }
  0x4a   :  { %565 = vmatpush.msrb.mxu2 %v2637_v38  ;;  %640 = vmatpush.msrb.mxu3 %v639_v3  ;;  %v651_v42 = vand.u32 4294901760, %v650_v59  ;;  %v3569_v43 = vand.u32 4294901760, %v2530_v46  ;;  %v668_v3 = vsub.f32 %v2747_v54, %v667_v60  ;;  %v673_v62 = vand.u32 4294901760, %v2771_v14 }
  0x4b   :  { %451 = vmatpush.msrb.mxu0 %v3565_v20  ;;  %502 = vmatpush.msrb.mxu1 %v2453_v5  ;;  %v3568_v5 = vand.u32 4294901760, %v2728_v49  ;;  %v142_v20 = vadd.f32 1e-08, %v141_v25  ;;  %v2797_v59 = vsub.f32 %v542_v23, %v2773_v22  ;;  %v3570_v46 = vand.u32 4294901760, %v2542_v52 }
  0x4c   :  { %567 = vmatpush.msrb.mxu2 %v2645_v58  ;;  %646 = vmatpush.msrb.mxu3 %v645_v4  ;;  %v2803_v25 = vand.u32 4294901760, %v2711_v0  ;;  %v201_v4 = vsub.f32 %v2758_v15, %v200_v16  ;;  %v2810_v23 = vand.u32 4294901760, %v540_v36  ;;  %v3571_v52 = vand.u32 4294901760, %v2547_v53 }
  0x4d   :  { %455 = vmatpush.msrb.mxu0 %v3567_v29  ;;  %504 = vmatpush.msrb.mxu1 %v2455_v9  ;;  %v662_v19 = vsub.f32 %v2728_v49, %v3568_v5  ;;  %v2789_v9 = vand.u32 4294901760, %v541_v34  ;;  %v657_v29 = vand.u32 4294901760, %v656_v2  ;;  %v679_v2 = vand.u32 4294901760, %v2784_v6 }
  0x4e   :  { %569 = vmatpush.msrb.mxu2 %v2657_v45  ;;  %652 = vmatpush.msrb.mxu3 %v651_v42  ;;  %2127 = vlog2.f32 %v142_v20  ;;  %v669_v5 = vand.u32 4294901760, %v668_v3  ;;  %v685_v42 = vand.u32 4294901760, %v2797_v59  ;;  %v3572_v20 = vand.u32 4294901760, %v2566_v1 }
  0x4f   :  { %459 = vmatpush.msrb.mxu0 %v3569_v43  ;;  %506 = vmatpush.msrb.mxu1 %v2457_v10  ;;  %v663_v10 = vand.u32 4294901760, %v662_v19  ;;  %v674_v19 = vsub.f32 %v2771_v14, %v673_v62  ;;  %v202_v53 = vand.u32 4294901760, %v201_v4  ;;  %v2835_v43 = vsub.f32 %v540_v36, %v2810_v23 }
  0x50   :  { %571 = vmatpush.msrb.mxu2 %v2680_v24  ;;  %658 = vmatpush.msrb.mxu3 %v657_v29  ;;  %v3573_v1 = vand.u32 4294901760, %v2580_v26  ;;  %v686_v3 = vsub.f32 %v2797_v59, %v685_v42 }
  0x51   :  { %463 = vmatpush.msrb.mxu0 %v3570_v46  ;;  %508 = vmatpush.msrb.mxu1 %v2459_v11  ;;  %v2816_v11 = vsub.f32 %v541_v34, %v2789_v9  ;;  %v680_v34 = vsub.f32 %v2784_v6, %v679_v2  ;;  %v675_v29 = vand.u32 4294901760, %v674_v19  ;;  %v3574_v46 = vand.u32 4294901760, %v2594_v39 }
  0x52   :  { %573 = vmatpush.msrb.mxu2 %v2693_v47  ;;  %664 = vmatpush.msrb.mxu3 %v663_v10  ;;  %v697_v36 = vand.u32 4294901760, %v2835_v43  ;;  %v3575_v10 = vand.u32 4294901760, %v2607_v50 }
  0x53   :  { %467 = vmatpush.msrb.mxu0 %v3571_v52  ;;  %510 = vmatpush.msrb.mxu1 %v2472_v17  ;;  %v2828_v17 = vsub.f32 %v2711_v0, %v2803_v25  ;;  %v3576_v52 = vand.u32 4294901760, %v2624_v12 }
  0x54   :  { %575 = vmatpush.msrb.mxu2 %v2702_v61  ;;  %v2128_v0 = vpop.eup %2127  ;;  %670 = vmatpush.msrb.mxu3 %v669_v5 }
  0x55   :  { %471 = vmatpush.msrb.mxu0 %v3572_v20  ;;  %512 = vmatpush.msrb.mxu1 %v2480_v21  ;;  %v691_v21 = vand.u32 4294901760, %v2816_v11  ;;  %v208_v26 = vand.u32 4294901760, %v2828_v17  ;;  %v144_v4 = vmul.f32 0.6931472, %v2128_v0  ;;  %v3577_v20 = vand.u32 4294901760, %v2602_v44  ;;  %v3584_v0 = vld [vmem:[#allocation25_spill] sm:$0xff] }
  0x56   :  { %577 = vmatpush.msrb.mxu2 %v2720_v8  ;;  %203 = vmatmul.f32.vlgmr.msra.gmra.mxu0 %v202_v53  ;;  %v3581_v53 = vand.u32 4294901760, %v2635_v7 }
  0x57   :  { %475 = vmatpush.msrb.mxu0 %v3573_v1  ;;  %514 = vmatpush.msrb.mxu1 %v2492_v28  ;;  %v681_v28 = vand.u32 4294901760, %v680_v34  ;;  %v692_v39 = vsub.f32 %v2816_v11, %v691_v21  ;;  %v209_v5 = vsub.f32 %v2828_v17, %v208_v26  ;;  %v145_v19 = vmul.f32 0.5, %v144_v4 }
  0x58   :  { %579 = vmatpush.msrb.mxu2 %v2744_v27  ;;  %676 = vmatpush.msrb.mxu3 %v675_v29  ;;  %v3583_v34 = vand.u32 4294901760, %v2643_v48  ;;  %v3585_v29 = vand.u32 4294901760, %v2665_v33 }
  0x59   :  { %479 = vmatpush.msrb.mxu0 %v3574_v46  ;;  %516 = vmatpush.msrb.mxu1 %v2510_v35  ;;  %v687_v35 = vand.u32 4294901760, %v686_v3  ;;  %v693_v50 = vand.u32 4294901760, %v692_v39  ;;  %v3587_v46 = vand.u32 4294901760, %v2686_v13 }
  0x5a   :  { %581 = vmatpush.msrb.mxu2 %v2760_v37  ;;  %312 = vmatmul.f32.vlgmr.msra.gmra.mxu1 %v2732_v31 }
  0x5b   :  { %483 = vmatpush.msrb.mxu0 %v3575_v10  ;;  %518 = vmatpush.msrb.mxu1 %v2522_v41  ;;  %v698_v41 = vsub.f32 %v2835_v43, %v697_v36 }
  0x5c   :  { %583 = vmatpush.msrb.mxu2 %v2773_v22  ;;  %682 = vmatpush.msrb.mxu3 %v681_v28 }
  0x5d   :  { %487 = vmatpush.msrb.mxu0 %v3576_v52  ;;  %520 = vmatpush.msrb.mxu1 %v2539_v51  ;;  %v210_v51 = vand.u32 4294901760, %v209_v5  ;;  %v699_v12 = vand.u32 4294901760, %v698_v41 }
  0x5e   :  { %585 = vmatpush.msrb.mxu2 %v2789_v9  ;;  %688 = vmatpush.msrb.mxu3 %v687_v35 }
  0x5f   :  { %712 = vmatpush.msra.mxu0 %v2602_v44  ;;  %522 = vmatpush.msrb.mxu1 %v2553_v57  ;;  %v2875_v57 = vand.u32 4294901760, %v145_v19  ;;  %v3580_v44 = vld [vmem:[#allocation24_spill] sm:$0xff] }
  0x60   :  { %370 = vmatmul.f32.vlgmr.msra.gmra.mxu2 %v2758_v15  ;;  %414 = vmatmul.f32.vlgmr.msra.gmra.mxu3 %v200_v16  ;;  %v3578_v15 = vand.u32 4294901760, %v2614_v55 }
  0x61   :  { %715 = vmatpush.msra.mxu0 %v2614_v55  ;;  %524 = vmatpush.msrb.mxu1 %v2562_v63  ;;  %v3579_v63 = vld [vmem:[#allocation22_spill] sm:$0xff]  ;;  %v2886_v16 = vsub.f32 %v145_v19, %v2875_v57  ;;  %v138_v55 = vld [vmem:[#allocation7] sm:$0xff] }
  0x62   :  { %587 = vmatpush.msrb.mxu2 %v2810_v23  ;;  %694 = vmatpush.msrb.mxu3 %v693_v50 }
  0x63   :  { %718 = vmatpush.msra.mxu0 %v2635_v7  ;;  %526 = vmatpush.msrb.mxu1 %v2577_v18  ;;  %v3582_v18 = vld [vmem:[#allocation23_spill] sm:$0xff]  ;;  %v590_v1 = vand.u32 4294901760, %v2886_v16  ;;  %v2902_v7 = vand.u32 4294901760, %v138_v55 }
  0x64   :  { %817 = vmatpush.msra.mxu2 %v3577_v20  ;;  %211 = vmatmul.f32.gmra.mxu0 %v210_v51 }
  0x65   :  { %700 = vmatpush.msrb.mxu3 %v699_v12  ;;  %721 = vmatpush.msra.mxu0 %v2643_v48  ;;  %v591_v48 = vsub.f32 %v2886_v16, %v590_v1  ;;  %v597_v3 = vsub.f32 %v138_v55, %v2902_v7 }
  0x66   :  { %821 = vmatpush.msra.mxu2 %v3578_v15  ;;  %316 = vmatmul.f32.gmra.mxu1 %v2803_v25 }
  0x67   :  { %888 = vmatpush.msra.mxu3 %v3579_v63  ;;  %724 = vmatpush.msra.mxu0 %v2665_v33  ;;  %v592_v33 = vand.u32 4294901760, %v591_v48 }
  0x68   :  { %528 = vmatpush.msrb.mxu1 %v3580_v44  ;;  %825 = vmatpush.msra.mxu2 %v3581_v53  ;;  %v2122_v53 = vld [vmem:[%s3501_s7] ss:$0 sm:$0xff] }
  0x69   :  { %890 = vmatpush.msra.mxu3 %v3582_v18  ;;  %727 = vmatpush.msra.mxu0 %v2674_v30 }
  0x6a   :  { %770 = vmatpush.msra.mxu1 %v3579_v63  ;;  %829 = vmatpush.msra.mxu2 %v3583_v34 }
  0x6b   :  { %892 = vmatpush.msra.mxu3 %v3584_v0  ;;  %375 = vmatmul.f32.gmra.mxu2 %v2828_v17  ;;  %v3586_v17 = vand.u32 4294901760, %v2674_v30  ;;  %v3588_v30 = vand.u32 4294901760, %v2706_v32 }
  0x6c   :  { %772 = vmatpush.msra.mxu1 %v3582_v18  ;;  %420 = vmatmul.f32.gmra.mxu3 %v208_v26 }
  0x6d   :  { %730 = vmatpush.msra.mxu0 %v2686_v13  ;;  %833 = vmatpush.msra.mxu2 %v3585_v29 }
  0x6e   :  { %774 = vmatpush.msra.mxu1 %v3584_v0  ;;  %894 = vmatpush.msra.mxu3 %v2616_v56 }
  0x6f   :  { %489 = vmatmul.f32.vlgmr.msrb.gmra.mxu0 %v2732_v31  ;;  %837 = vmatpush.msra.mxu2 %v3586_v17 }
  0x70   :  { %776 = vmatpush.msra.mxu1 %v2616_v56  ;;  %733 = vmatpush.msra.mxu0 %v2706_v32  ;;  %v598_v56 = vand.u32 4294901760, %v597_v3 }
  0x71   :  { %896 = vmatpush.msra.mxu3 %v2637_v38  ;;  %530 = vmatmul.f32.vlgmr.msrb.gmra.mxu1 %v2732_v31  ;;  %v3589_v31 = vand.u32 4294901760, %v2718_v40 }
  0x72   :  { %736 = vmatpush.msra.mxu0 %v2718_v40  ;;  %778 = vmatpush.msra.mxu1 %v2637_v38  ;;  %v599_v38 = vsub.f32 %v597_v3, %v598_v56 }
  0x73   :  { %841 = vmatpush.msra.mxu2 %v3587_v46  ;;  %898 = vmatpush.msra.mxu3 %v2645_v58 }
  0x74   :  { %739 = vmatpush.msra.mxu0 %v2728_v49  ;;  %780 = vmatpush.msra.mxu1 %v2645_v58  ;;  %v3590_v58 = vand.u32 4294901760, %v2728_v49 }
  0x75   :  { %845 = vmatpush.msra.mxu2 %v3588_v30  ;;  %900 = vmatpush.msra.mxu3 %v2657_v45 }
  0x76   :  { %593 = vmatmul.f32.vlgmr.msrb.gmra.mxu2 %v592_v33  ;;  %702 = vmatmul.f32.vlgmr.msrb.gmra.mxu3 %v2875_v57 }
  0x77   :  { %742 = vmatpush.msra.mxu0 %v2747_v54  ;;  %782 = vmatpush.msra.mxu1 %v2657_v45  ;;  %v600_v45 = vand.u32 4294901760, %v599_v38 }
  0x78   :  { %849 = vmatpush.msra.mxu2 %v3589_v31  ;;  %902 = vmatpush.msra.mxu3 %v2680_v24 }
  0x79   :  { %493 = vmatmul.f32.gmra.mxu0 %v2803_v25  ;;  %784 = vmatpush.msra.mxu1 %v2680_v24  ;;  %v2120_v24 = vld [vmem:[%s3498_s4] ss:$0 sm:$0xff] }
  0x7a   :  { %745 = vmatpush.msra.mxu0 %v2771_v14  ;;  %853 = vmatpush.msra.mxu2 %v3590_v58 }
  0x7b   :  { %904 = vmatpush.msra.mxu3 %v2693_v47  ;;  %534 = vmatmul.f32.gmra.mxu1 %v2803_v25 }
  0x7c   :  { %748 = vmatpush.msra.mxu0 %v2784_v6  ;;  %786 = vmatpush.msra.mxu1 %v2693_v47 }
  0x7d   :  { %857 = vmatpush.msra.mxu2 %v667_v60  ;;  %906 = vmatpush.msra.mxu3 %v2702_v61 }
  0x7e   :  { %751 = vmatpush.msra.mxu0 %v2797_v59  ;;  %788 = vmatpush.msra.mxu1 %v2702_v61 }
  0x7f   :  { %861 = vmatpush.msra.mxu2 %v673_v62  ;;  %908 = vmatpush.msra.mxu3 %v2720_v8 }
  0x80   :  { %601 = vmatmul.f32.gmra.mxu2 %v600_v45  ;;  %706 = vmatmul.f32.gmra.mxu3 %v2902_v7  ;;  %v2347_v45 = vmov 683565275  }
  0x81   :  { %754 = vmatpush.msra.mxu0 %v2816_v11  ;;  %790 = vmatpush.msra.mxu1 %v2720_v8 }
  0x82   :  { %865 = vmatpush.msra.mxu2 %v679_v2  ;;  %910 = vmatpush.msra.mxu3 %v2744_v27 }
  0x83   :  { %757 = vmatpush.msra.mxu0 %v2835_v43  ;;  %792 = vmatpush.msra.mxu1 %v2744_v27 }
  0x84   :  { %869 = vmatpush.msra.mxu2 %v685_v42  ;;  %912 = vmatpush.msra.mxu3 %v2760_v37 }
  0x85   :  { %760 = vmatmul.f32.vlgmr.msra.gmra.mxu0 %v2886_v16  ;;  %794 = vmatpush.msra.mxu1 %v2760_v37 }
  0x86   :  { %873 = vmatpush.msra.mxu2 %v691_v21  ;;  %914 = vmatpush.msra.mxu3 %v2773_v22 }
  0x87   :  { %796 = vmatpush.msra.mxu1 %v2773_v22 }
  0x88   :  { %877 = vmatpush.msra.mxu2 %v697_v36  ;;  %916 = vmatpush.msra.mxu3 %v2789_v9 }
  0x89   :  { %879 = vmatmul.f32.vlgmr.msra.gmra.mxu2 %v2875_v57  ;;  %798 = vmatpush.msra.mxu1 %v2789_v9 }
  0x8a   :  { %918 = vmatpush.msra.mxu3 %v2810_v23 }
  0x8b   :  { %920 = vmatmul.f32.vlgmr.msra.gmra.mxu3 %v2875_v57  ;;  %800 = vmatpush.msra.mxu1 %v2810_v23 }
  0x8c   :  { %804 = vmatmul.f32.vlgmr.msra.gmra.mxu1 %v590_v1 }
  0x8d   :  { %765 = vmatmul.f32.gmra.mxu0 %v597_v3 }
  0x91   :  { %883 = vmatmul.f32.gmra.mxu2 %v2902_v7 }
  0x93   :  { %924 = vmatmul.f32.gmra.mxu3 %v2902_v7 }
  0x94   :  { %810 = vmatmul.f32.gmra.mxu1 %v598_v56 }
  0xd3   :  { %v204_v47 = vpop.f32.mrf.mxu0 }
  0xd4   :  { %v205_v8 = vadd.f32 %v2120_v24, %v204_v47  ;;  %v2348_v47 = vmov 2475754826  }
  0xd7   :  { %v313_v54 = vpop.f32.mrf.mxu1 }
  0xd8   :  { %v314_v13 = vadd.f32 %v313_v54, %v205_v8  ;;  %v2349_v54 = vmov 2131351028  }
  0xe1   :  { %v212_v32 = vpop.f32.mrf.mxu0 }
  0xe2   :  { %v213_v61 = vadd.f32 %v2120_v24, %v212_v32  ;;  %v2350_v32 = vmov 2102212464  }
  0xe3   :  { %v371_v40 = vpop.f32.mrf.mxu2  ;;  %v317_v49 = vpop.f32.mrf.mxu1 }
  0xe4   :  { %v372_v27 = vadd.f32 %v371_v40, %v314_v13  ;;  %v318_v22 = vadd.f32 %v317_v49, %v213_v61  ;;  %v415_v37 = vpop.f32.mrf.mxu3 }
  0xe6   :  { %v416_v60 = vadd.f32 %v415_v37, %v372_v27 }
  0xec   :  { %v490_v14 = vpop.f32.mrf.mxu0 }
  0xed   :  { %v491_v6 = vadd.f32 %v490_v14, %v416_v60 }
  0xee   :  { %v531_v9 = vpop.f32.mrf.mxu1  ;;  %v376_v59 = vpop.f32.mrf.mxu2 }
  0xef   :  { %v2985_v62 = vadd.f32 %v531_v9, %v491_v6  ;;  %v421_v25 = vpop.f32.mrf.mxu3  ;;  %v377_v2 = vadd.f32 %v376_v59, %v318_v22  ;;  %v2351_v22 = vmov 920167782   ;;  %v2352_v6 = vmov 1326507024  }
  0xf1   :  { %v422_v23 = vadd.f32 %v421_v25, %v377_v2 }
  0xf6   :  { %v494_v11 = vpop.f32.mrf.mxu0 }
  0xf7   :  { %v495_v42 = vadd.f32 %v494_v11, %v422_v23  ;;  %v1268_v23 = vld [vmem:[#allocation11 + $0x78] sm:$0xff] }
  0xf8   :  { %v535_v43 = vpop.f32.mrf.mxu1 }
  0xf9   :  { %v2987_v21 = vadd.f32 %v535_v43, %v495_v42  ;;  %v594_v26 = vpop.f32.mrf.mxu2  ;;  %v703_v28 = vpop.f32.mrf.mxu3  ;;  %v3008_v43 = vand.u32 4294901760, %v1268_v23 }
  0xfa   :  { %v704_v36 = vadd.f32 %v703_v28, %v594_v26 }
  0xfb   :  { %1270 = vmatpush.msrb.mxu0 %v3008_v43  ;;  %1483 = vmatpush.msrb.mxu3 %v3008_v43 }
 0x102   :  { %v761_v10 = vpop.f32.mrf.mxu0 }
 0x103   :  { %v762_v39 = vadd.f32 %v761_v10, %v704_v36  ;;  %v602_v4 = vpop.f32.mrf.mxu2  ;;  %v707_v35 = vpop.f32.mrf.mxu3 }
 0x104   :  { %v708_v51 = vadd.f32 %v707_v35, %v602_v4 }
 0x109   :  { %v805_v52 = vpop.f32.mrf.mxu1 }
 0x10a   :  { %v806_v5 = vadd.f32 %v805_v52, %v762_v39  ;;  %v766_v50 = vpop.f32.mrf.mxu0  ;;  %v1267_v39 = vld [vmem:[#allocation11 + $0x70] sm:$0xff] }
 0x10b   :  { %v767_v20 = vadd.f32 %v766_v50, %v708_v51  ;;  %v1266_v51 = vld [vmem:[#allocation11 + $0x68] sm:$0xff] }
 0x10c   :  { %v880_v41 = vpop.f32.mrf.mxu2 }
 0x10d   :  { %v881_v19 = vadd.f32 %v880_v41, %v806_v5  ;;  %v3012_v5 = vsub.f32 %v1268_v23, %v3008_v43 }
 0x10e   :  { %v921_v12 = vpop.f32.mrf.mxu3 }
 0x10f   :  { %v2989_v57 = vadd.f32 %v921_v12, %v881_v19  ;;  %3591 = vst [vmem:[#allocation22_spill] sm:$0xff] %v3012_v5  ;;  %v3018_v19 = vand.u32 4294901760, %v1267_v39  ;;  %1425 = vmatpush.msrb.mxu2 %v3012_v5 }
 0x111   :  { %v811_v15 = vpop.f32.mrf.mxu1  ;;  %1272 = vmatpush.msrb.mxu0 %v3018_v19  ;;  %1485 = vmatpush.msrb.mxu3 %v3018_v19 }
 0x112   :  { %v812_v63 = vadd.f32 %v811_v15, %v767_v20 }
 0x114   :  { %v884_v16 = vpop.f32.mrf.mxu2 }
 0x115   :  { %v885_v44 = vadd.f32 %v884_v16, %v812_v63  ;;  %v3023_v63 = vand.u32 4294901760, %v3012_v5 }
 0x116   :  { %v925_v18 = vpop.f32.mrf.mxu3 }
 0x117   :  { %v926_v55 = vadd.f32 %v925_v18, %v885_v44 }
 0x119   :  { %v2994_v34 = vadd.f32 %v2122_v53, %v926_v55  ;;  %v1265_v55 = vld [vmem:[#allocation11 + $0x60] sm:$0xff] }
 0x11b   :  { %v3534_v1 = vand.u32 2147483647, %v2994_v34  ;;  %v943_v0 = vand.u32 2139095040, %v2994_v34  ;;  %vm942_vm12 = vcmp.lt.s32.totalorder %v2994_v34, 0 }
 0x11d   :  { %v944_v7 = vshrl.u32 %v943_v0, 23  ;;  %v947_v29 = vand.u32 8388607, %v3534_v1  ;;  %v1321_v0 = vsub.f32 %v3012_v5, %v3023_v63 }
 0x11f   :  { %v2097_v48 = vadd.s32 4294967169, %v944_v7  ;;  %v948_v17 = vor.u32 8388608, %v947_v29  ;;  %v3031_v7 = vsub.f32 %v1267_v39, %v3018_v19  ;;  %v3033_v29 = vand.u32 4294901760, %v1266_v51 }
 0x121   :  { %v950_v3 = vadd.s32 1, %v2097_v48  ;;  %v3000_v33 = vshll.u32 %v948_v17, 8  ;;  %3592 = vst [vmem:[#allocation24_spill] sm:$0xff] %v3031_v7  ;;  %v3035_v48 = vand.u32 4294901760, %v1265_v55  ;;  %1274 = vmatpush.msrb.mxu0 %v3033_v29  ;;  %1428 = vmatpush.msrb.mxu2 %v3031_v7 }
 0x122   :  { %1487 = vmatpush.msrb.mxu3 %v3033_v29 }
 0x123   :  { %vm951_vm0 = vcmp.gt.s32.totalorder %v950_v3, 0  ;;  %v3003_v38 = vand.u32 65535, %v3000_v33  ;;  %v3006_v58 = vshrl.u32 %v3000_v33, 16  ;;  %1276 = vmatpush.msrb.mxu0 %v3035_v48 }
 0x124   :  { %v952_v46 = vsel %vm951_vm0, %v950_v3, 0  ;;  %1489 = vmatpush.msrb.mxu3 %v3035_v48 }
 0x125   :  { %v954_v56 = vand.u32 31, %v952_v46  ;;  %v953_v30 = vshrl.u32 %v952_v46, 5 }
 0x127   :  { %v955_v31 = vsub.s32 32, %v954_v56  ;;  %v957_v24 = vshll.u32 %v2347_v45, %v954_v56  ;;  %v960_v8 = vshll.u32 %v2348_v47, %v954_v56  ;;  %v963_v13 = vshll.u32 %v2349_v54, %v954_v56 }
 0x128   :  { %v966_v61 = vshll.u32 %v2350_v32, %v954_v56  ;;  %v969_v37 = vshll.u32 %v2351_v22, %v954_v56  ;;  %vm972_vm1 = vcmp.lt.s32.totalorder %v953_v30, 1  ;;  %vm974_vm2 = vcmp.lt.s32.totalorder %v953_v30, 3 }
 0x129   :  { %v958_v40 = vshrl.u32 %v2348_v47, %v955_v31  ;;  %v961_v49 = vshrl.u32 %v2349_v54, %v955_v31  ;;  %v964_v27 = vshrl.u32 %v2350_v32, %v955_v31  ;;  %v956_v60 = vshrl.u32 %v2347_v45, %v955_v31 }
 0x12a   :  { %v967_v14 = vshrl.u32 %v2351_v22, %v955_v31  ;;  %v970_v9 = vshrl.u32 %v2352_v6, %v955_v31  ;;  %vm975_vm3 = vcmp.lt.s32.totalorder %v953_v30, 4  ;;  %vm973_vm4 = vcmp.lt.s32.totalorder %v953_v30, 2 }
 0x12b   :  { %v959_v59 = vor.u32 %v958_v40, %v957_v24  ;;  %v962_v25 = vor.u32 %v961_v49, %v960_v8  ;;  %v965_v2 = vor.u32 %v964_v27, %v963_v13  ;;  %v3053_v49 = vand.u32 4294901760, %v1321_v0 }
 0x12c   :  { %v968_v11 = vor.u32 %v967_v14, %v966_v61  ;;  %v971_v42 = vor.u32 %v970_v9, %v969_v37  ;;  %v3056_v27 = vand.u32 4294901760, %v3031_v7  ;;  %v2353_v22 = vmov 0  }
 0x12d   :  { %v976_v26 = vsel %vm972_vm1, %v956_v60, %v959_v59  ;;  %v977_v28 = vsel %vm975_vm3, %v965_v2, 2102212464  ;;  %v980_v36 = vsel %vm972_vm1, %v959_v59, %v962_v25  ;;  %v984_v10 = vsel %vm972_vm1, %v962_v25, %v965_v2  ;;  %1323 = vmatpush.msrb.mxu1 %v3053_v49 }
 0x12e   :  { %v978_v4 = vsel %vm974_vm2, %v962_v25, %v977_v28  ;;  %v981_v35 = vsel %vm975_vm3, %v968_v11, 920167782  ;;  %v985_v52 = vsel %vm975_vm3, %v971_v42, 1326507024  ;;  %3593 = vst [vmem:[#allocation23_spill] sm:$0xff] %v3056_v27  ;;  %v3060_v14 = vsub.f32 %v1266_v51, %v3033_v29  ;;  %v1264_v25 = vld [vmem:[#allocation11 + $0x58] sm:$0xff] }
 0x12f   :  { %v982_v41 = vsel %vm974_vm2, %v965_v2, %v981_v35  ;;  %v986_v50 = vsel %vm974_vm2, %v968_v11, %v985_v52  ;;  %v3020_v12 = vsel %vm973_vm4, %v976_v26, %v978_v4  ;;  %v1327_v59 = vsub.f32 %v3031_v7, %v3056_v27  ;;  %v1263_v2 = vld [vmem:[#allocation11 + $0x50] sm:$0xff]  ;;  %v1262_v26 = vld [vmem:[#allocation11 + $0x48] sm:$0xff]  ;;  %v1261_v28 = vld [vmem:[#allocation11 + $0x40] sm:$0xff] }
 0x130   :  { %v983_v20 = vsel %vm973_vm4, %v980_v36, %v982_v41  ;;  %v987_v15 = vsel %vm973_vm4, %v984_v10, %v986_v50  ;;  %3594 = vst [vmem:[#allocation25_spill] sm:$0xff] %v3060_v14  ;;  %1431 = vmatpush.msrb.mxu2 %v3060_v14  ;;  %v3071_v4 = vand.u32 4294901760, %v3060_v14  ;;  %v3074_v52 = vsub.f32 %v1265_v55, %v3035_v48 }
 0x131   :  { %v991_v16 = vand.u32 65535, %v987_v15  ;;  %v992_v44 = vshrl.u32 %v987_v15, 16  ;;  %v1013_v53 = vand.u32 65535, %v983_v20  ;;  %v1014_v18 = vshrl.u32 %v983_v20, 16 }
 0x132   :  { %v3068_v39 = vand.u32 4294901760, %v1327_v59  ;;  %3595 = vst [vmem:[#allocation26_spill] sm:$0xff] %v3074_v52  ;;  %v3076_v41 = vand.u32 4294901760, %v1264_v25  ;;  %v3078_v50 = vand.u32 4294901760, %v1263_v2  ;;  %v1333_v20 = vsub.f32 %v3060_v14, %v3071_v4  ;;  %1434 = vmatpush.msrb.mxu2 %v3074_v52 }
 0x133   :  { %v993_v17 = vmul.u32 %v991_v16, %v3003_v38  ;;  %v994_v3 = vmul.u32 %v992_v44, %v3003_v38  ;;  %v995_v46 = vmul.u32 %v991_v16, %v3006_v58  ;;  %v996_v56 = vmul.u32 %v992_v44, %v3006_v58 }
 0x134   :  { %v1015_v30 = vmul.u32 %v1013_v53, %v3003_v38  ;;  %v1016_v31 = vmul.u32 %v1014_v18, %v3003_v38  ;;  %v3044_v45 = vmul.u32 %v1013_v53, %v3006_v58  ;;  %v1018_v24 = vmul.u32 %v1014_v18, %v3006_v58  ;;  %1329 = vmatpush.msrb.mxu1 %v3068_v39 }
 0x135   :  { %v997_v47 = vshll.u32 %v994_v3, 16  ;;  %v998_v8 = vshrl.u32 %v994_v3, 16  ;;  %v999_v54 = vshll.u32 %v995_v46, 16  ;;  %v1000_v13 = vshrl.u32 %v995_v46, 16  ;;  %1278 = vmatpush.msrb.mxu0 %v3076_v41  ;;  %1491 = vmatpush.msrb.mxu3 %v3076_v41 }
 0x136   :  { %v1019_v32 = vshll.u32 %v1016_v31, 16  ;;  %v1020_v61 = vshrl.u32 %v1016_v31, 16  ;;  %v1021_v40 = vshll.u32 %v3044_v45, 16  ;;  %v1022_v38 = vshrl.u32 %v3044_v45, 16 }
 0x137   :  { %vm1001_vm5 = vc.u32 %v993_v17, %v997_v47  ;;  %v1003_v58 = vadd.s32 %v997_v47, %v993_v17  ;;  %v3083_v15 = vand.u32 4294901760, %v1262_v26  ;;  %v3085_v16 = vand.u32 4294901760, %v1261_v28  ;;  %1280 = vmatpush.msrb.mxu0 %v3078_v50  ;;  %v1259_v47 = vld [vmem:[#allocation11 + $0x30] sm:$0xff]  ;;  %1493 = vmatpush.msrb.mxu3 %v3078_v50 }
 0x138   :  { %v1002_v37 = vsel %vm1001_vm5, 1, %v2353_v22  ;;  %vm1023_vm6 = vc.u32 %v1015_v30, %v1019_v32  ;;  %v1025_v60 = vadd.s32 %v1019_v32, %v1015_v30  ;;  %v3088_v53 = vand.u32 4294901760, %v3074_v52  ;;  %v1258_v32 = vld [vmem:[#allocation11 + $0x28] sm:$0xff] }
 0x139   :  { %v1004_v6 = vadd.s32 %v1002_v37, %v996_v56  ;;  %vm1005_vm7 = vc.u32 %v1003_v58, %v999_v54  ;;  %v1024_v9 = vsel %vm1023_vm6, 1, %v2353_v22  ;;  %v3091_v18 = vsub.f32 %v1264_v25, %v3076_v41  ;;  %1282 = vmatpush.msrb.mxu0 %v3083_v15  ;;  %1495 = vmatpush.msrb.mxu3 %v3083_v15 }
 0x13a   :  { %v1006_v23 = vsel %vm1005_vm7, 1, %v2353_v22  ;;  %v1026_v11 = vadd.s32 %v1024_v9, %v1018_v24  ;;  %vm1027_vm8 = vc.u32 %v1025_v60, %v1021_v40  ;;  %v3065_v42 = vadd.s32 %v1025_v60, %v1021_v40  ;;  %v1260_v24 = vld [vmem:[#allocation11 + $0x38] sm:$0xff]  ;;  %v1257_v60 = vld [vmem:[#allocation11 + $0x20] sm:$0xff] }
 0x13b   :  { %v1008_v36 = vadd.s32 %v1006_v23, %v1004_v6  ;;  %v1028_v10 = vsel %vm1027_vm8, 1, %v2353_v22  ;;  %3596 = vst [vmem:[#allocation27_spill] sm:$0xff] %v3091_v18  ;;  %v3094_v55 = vsub.f32 %v1263_v2, %v3078_v50  ;;  %v3100_v17 = vand.u32 4294901760, %v1333_v20  ;;  %1437 = vmatpush.msrb.mxu2 %v3091_v18  ;;  %v1256_v6 = vld [vmem:[#allocation11 + $0x18] sm:$0xff]  ;;  %1284 = vmatpush.msrb.mxu0 %v3085_v16 }
 0x13c   :  { %v1030_v35 = vadd.s32 %v1028_v10, %v1026_v11  ;;  %v3103_v3 = vsub.f32 %v1262_v26, %v3083_v15  ;;  %v3106_v46 = vsub.f32 %v1261_v28, %v3085_v16  ;;  %v1339_v30 = vsub.f32 %v3074_v52, %v3088_v53  ;;  %v1255_v28 = vld [vmem:[#allocation11 + $0x10] sm:$0xff]  ;;  %1497 = vmatpush.msrb.mxu3 %v3085_v16 }
 0x13d   :  { %v1009_v51 = vadd.s32 %v1008_v36, %v998_v8  ;;  %3597 = vst [vmem:[#allocation28_spill] sm:$0xff] %v3094_v55  ;;  %v3112_v31 = vand.u32 4294901760, %v3091_v18  ;;  %v3115_v45 = vand.u32 4294901760, %v3094_v55  ;;  %v1033_v8 = vmul.u32 %v3000_v33, %v3020_v12  ;;  %1335 = vmatpush.msrb.mxu1 %v3100_v17  ;;  %1440 = vmatpush.msrb.mxu2 %v3094_v55 }
 0x13e   :  { %v1031_v44 = vadd.s32 %v1030_v35, %v1020_v61  ;;  %3598 = vst [vmem:[#allocation29_spill] sm:$0xff] %v3103_v3  ;;  %v3125_v54 = vand.u32 4294901760, %v3103_v3  ;;  %v3131_v40 = vand.u32 4294901760, %v1339_v30  ;;  %v3143_v22 = vand.u32 4294901760, %v1260_v24 }
 0x13f   :  { %v3098_v0 = vadd.s32 %v1009_v51, %v1000_v13  ;;  %3599 = vst [vmem:[#allocation30_spill] sm:$0xff] %v3106_v46  ;;  %v3128_v13 = vand.u32 4294901760, %v3106_v46  ;;  %v1345_v33 = vsub.f32 %v3091_v18, %v3112_v31  ;;  %v1351_v12 = vsub.f32 %v3094_v55, %v3115_v45  ;;  %1443 = vmatpush.msrb.mxu2 %v3103_v3 }
 0x140   :  { %v1032_v56 = vadd.s32 %v1031_v44, %v1022_v38  ;;  %v1357_v38 = vsub.f32 %v3103_v3, %v3125_v54  ;;  %v3145_v37 = vand.u32 4294901760, %v1259_v47  ;;  %1341 = vmatpush.msrb.mxu1 %v3131_v40  ;;  %v3156_v2 = vand.u32 4294901760, %v1258_v32  ;;  %1286 = vmatpush.msrb.mxu0 %v3143_v22 }
 0x141   :  { %vm1035_vm9 = vc.u32 %v3098_v0, %v3065_v42  ;;  %v1363_v58 = vsub.f32 %v3106_v46, %v3128_v13  ;;  %v3152_v59 = vand.u32 4294901760, %v1345_v33  ;;  %v3154_v25 = vand.u32 4294901760, %v1351_v12  ;;  %1446 = vmatpush.msrb.mxu2 %v3106_v46  ;;  %1499 = vmatpush.msrb.mxu3 %v3143_v22 }
 0x142   :  { %v1036_v61 = vadd.s32 1, %v1032_v56  ;;  %v3159_v11 = vand.u32 4294901760, %v1357_v38  ;;  %v3162_v26 = vsub.f32 %v1260_v24, %v3143_v22  ;;  %v3168_v36 = vsub.f32 %v1259_v47, %v3145_v37  ;;  %v1254_v24 = vld [vmem:[#allocation11 + $0x8] sm:$0xff]  ;;  %1288 = vmatpush.msrb.mxu0 %v3145_v37 }
 0x143   :  { %1347 = vmatpush.msrb.mxu1 %v3152_v59  ;;  %v3171_v10 = vsub.f32 %v1258_v32, %v3156_v2  ;;  %v3173_v35 = vand.u32 4294901760, %v1257_v60  ;;  %v3176_v51 = vand.u32 4294901760, %v1256_v6  ;;  %v3178_v44 = vand.u32 4294901760, %v1363_v58  ;;  %1501 = vmatpush.msrb.mxu3 %v3145_v37 }
 0x144   :  { %v1037_v9 = vsel %vm1035_vm9, %v1036_v61, %v1032_v56  ;;  %3600 = vst [vmem:[#allocation31_spill] sm:$0xff] %v3162_v26  ;;  %v3181_v56 = vand.u32 4294901760, %v3162_v26  ;;  %v3183_v30 = vand.u32 4294901760, %v1255_v28  ;;  %v3189_v47 = vand.u32 4294901760, %v3168_v36  ;;  %1449 = vmatpush.msrb.mxu2 %v3162_v26  ;;  %1290 = vmatpush.msrb.mxu0 %v3156_v2 }
 0x145   :  { %v1038_v23 = vadd.s32 %v1037_v9, %v1033_v8  ;;  %3601 = vst [vmem:[#allocation32_spill] sm:$0xff] %v3168_v36  ;;  %1353 = vmatpush.msrb.mxu1 %v3154_v25  ;;  %v3192_v8 = vand.u32 4294901760, %v3171_v10  ;;  %v3195_v32 = vsub.f32 %v1257_v60, %v3173_v35  ;;  %v3198_v61 = vsub.f32 %v1256_v6, %v3176_v51 }
 0x146   :  { %3602 = vst [vmem:[#allocation33_spill] sm:$0xff] %v3171_v10  ;;  %v1369_v12 = vsub.f32 %v3162_v26, %v3181_v56  ;;  %v3206_v38 = vsub.f32 %v1255_v28, %v3183_v30  ;;  %v3208_v58 = vand.u32 4294901760, %v1254_v24  ;;  %v1375_v60 = vsub.f32 %v3168_v36, %v3189_v47  ;;  %v1253_v26 = vld [vmem:[#allocation11] sm:$0xff]  ;;  %1452 = vmatpush.msrb.mxu2 %v3168_v36 }
 0x147   :  { %v1039_v20 = vadd.s32 536870912, %v1038_v23  ;;  %3603 = vst [vmem:[#allocation34_spill] sm:$0xff] %v3195_v32  ;;  %1359 = vmatpush.msrb.mxu1 %v3159_v11  ;;  %v1381_v6 = vsub.f32 %v3171_v10, %v3192_v8  ;;  %v3218_v9 = vand.u32 4294901760, %v3195_v32  ;;  %v3221_v28 = vand.u32 4294901760, %v3198_v61  ;;  %1503 = vmatpush.msrb.mxu3 %v3156_v2 }
 0x148   :  { %3604 = vst [vmem:[#allocation35_spill] sm:$0xff] %v3198_v61  ;;  %v3225_v1 = vand.u32 4294901760, %v1369_v12  ;;  %v3230_v46 = vand.u32 4294901760, %v1375_v60  ;;  %v3235_v55 = vand.u32 4294901760, %v3206_v38  ;;  %1292 = vmatpush.msrb.mxu0 %v3173_v35  ;;  %v3239_v12 = vsub.f32 %v1254_v24, %v3208_v58  ;;  %1455 = vmatpush.msrb.mxu2 %v3171_v10 }
 0x149   :  { %v3201_v33 = vshrl.u32 %v1039_v20, 30  ;;  %3605 = vst [vmem:[#allocation36_spill] sm:$0xff] %v3206_v38  ;;  %1365 = vmatpush.msrb.mxu1 %v3178_v44  ;;  %v1387_v3 = vsub.f32 %v3195_v32, %v3218_v9  ;;  %v3243_v36 = vand.u32 4294901760, %v1381_v6  ;;  %v1393_v60 = vsub.f32 %v3198_v61, %v3221_v28  ;;  %1505 = vmatpush.msrb.mxu3 %v3173_v35 }
 0x14a   :  { %3606 = vst [vmem:[#allocation37_spill] sm:$0xff] %v3239_v12  ;;  %v3247_v52 = vand.u32 4294901760, %v1253_v26  ;;  %1294 = vmatpush.msrb.mxu0 %v3176_v51  ;;  %1458 = vmatpush.msrb.mxu2 %v3195_v32  ;;  %v1399_v24 = vsub.f32 %v3206_v38, %v3235_v55  ;;  %v3258_v6 = vand.u32 4294901760, %v3239_v12  ;;  %vm1083_vm4 = vweird.f32 %v2994_v34 }
 0x14b   :  { %v1041_v20 = vshll.u32 %v3201_v33, 30  ;;  %1371 = vmatpush.msrb.mxu1 %v3225_v1  ;;  %1507 = vmatpush.msrb.mxu3 %v3176_v51 }
 0x14c   :  { %1296 = vmatpush.msrb.mxu0 %v3183_v30  ;;  %1461 = vmatpush.msrb.mxu2 %v3198_v61  ;;  %v1405_v7 = vsub.f32 %v3239_v12, %v3258_v6 }
 0x14d   :  { %v1042_v18 = vsub.s32 %v1038_v23, %v1041_v20  ;;  %1377 = vmatpush.msrb.mxu1 %v3230_v46  ;;  %v3253_v23 = vand.u32 4294901760, %v1387_v3  ;;  %v3261_v20 = vsub.f32 %v1253_v26, %v3247_v52  ;;  %v3267_v3 = vand.u32 4294901760, %v1393_v60  ;;  %1509 = vmatpush.msrb.mxu3 %v3183_v30 }
 0x14e   :  { %1298 = vmatpush.msrb.mxu0 %v3208_v58  ;;  %1464 = vmatpush.msrb.mxu2 %v3206_v38  ;;  %v3278_v26 = vand.u32 4294901760, %v1399_v24  ;;  %v3286_v60 = vand.u32 4294901760, %v1405_v7  ;;  %v1034_v24 = vadd.s32 %v3065_v42, %v3098_v0 }
 0x14f   :  { %vm1043_vm10 = vcmp.lt.s32.totalorder %v1042_v18, 0  ;;  %v1044_v14 = vsub.s32 0, %v1042_v18  ;;  %1383 = vmatpush.msrb.mxu1 %v3243_v36  ;;  %v3272_v5 = vand.u32 4294901760, %v3261_v20  ;;  %1511 = vmatpush.msrb.mxu3 %v3208_v58 }
 0x150   :  { %1300 = vmatpush.msrb.mxu0 %v3247_v52  ;;  %1467 = vmatpush.msrb.mxu2 %v3239_v12 }
 0x151   :  { %v1045_v10 = vsel %vm1043_vm10, %v1044_v14, %v1042_v18  ;;  %1389 = vmatpush.msrb.mxu1 %v3253_v23  ;;  %1513 = vmatpush.msrb.mxu3 %v3247_v52 }
 0x152   :  { %v1046_v32 = vclz %v1045_v10  ;;  %v1411_v10 = vsub.f32 %v3261_v20, %v3272_v5  ;;  %1530 = vmatpush.msra.mxu0 %v3023_v63  ;;  %1470 = vmatpush.msrb.mxu2 %v3261_v20 }
 0x153   :  { %1395 = vmatpush.msrb.mxu1 %v3267_v3  ;;  %1699 = vmatpush.msra.mxu3 %v3053_v49 }
 0x154   :  { %v2098_v14 = vadd.s32 4294967294, %v1046_v32  ;;  %1534 = vmatpush.msra.mxu0 %v3056_v27  ;;  %v3294_v12 = vand.u32 4294901760, %v1411_v10  ;;  %1646 = vmatpush.msra.mxu2 %v3008_v43 }
 0x155   :  { %1401 = vmatpush.msrb.mxu1 %v3278_v26  ;;  %1705 = vmatpush.msra.mxu3 %v3068_v39 }
 0x156   :  { %vm2099_vm11 = vcmp.lt.s32.totalorder %v2098_v14, 0  ;;  %1538 = vmatpush.msra.mxu0 %v3071_v4  ;;  %1648 = vmatpush.msra.mxu2 %v3018_v19 }
 0x157   :  { %v1049_v32 = vsel %vm2099_vm11, 0, %v2098_v14  ;;  %1407 = vmatpush.msrb.mxu1 %v3286_v60  ;;  %1711 = vmatpush.msra.mxu3 %v3100_v17 }
 0x158   :  { %v1050_v38 = vsub.s32 32, %v1049_v32  ;;  %v1054_v61 = vsub.s32 4294967266, %v1049_v32  ;;  %v1051_v7 = vshll.u32 %v1042_v18, %v1049_v32  ;;  %1542 = vmatpush.msra.mxu0 %v3088_v53  ;;  %1650 = vmatpush.msra.mxu2 %v3033_v29 }
 0x159   :  { %1413 = vmatpush.msrb.mxu1 %v3294_v12  ;;  %1717 = vmatpush.msra.mxu3 %v3131_v40  ;;  %v3607_v40 = vand.u32 2147483647, %v2994_v34 }
 0x15a   :  { %v1052_v14 = vshrl.u32 %v1034_v24, %v1050_v38  ;;  %v1055_v27 = vadd.s32 127, %v1054_v61  ;;  %1546 = vmatpush.msra.mxu0 %v3112_v31  ;;  %1652 = vmatpush.msra.mxu2 %v3035_v48 }
 0x15b   :  { %1601 = vmatpush.msra.mxu1 %v3008_v43  ;;  %1723 = vmatpush.msra.mxu3 %v3152_v59  ;;  %vm3326_vm13 = vcmp.le.f32.partialorder %v3607_v40, 0.7853982 }
 0x15c   :  { %v1053_v42 = vor.u32 %v1052_v14, %v1051_v7  ;;  %v1056_v0 = vshll.u32 %v1055_v27, 23  ;;  %1550 = vmatpush.msra.mxu0 %v3115_v45  ;;  %1654 = vmatpush.msra.mxu2 %v3076_v41 }
 0x15d   :  { %1603 = vmatpush.msra.mxu1 %v3018_v19  ;;  %1729 = vmatpush.msra.mxu3 %v3154_v25  ;;  %v1064_v25 = vsub.s32 4, %v3201_v33 }
 0x15e   :  { %v1057_v49 = vor.u32 4788187, %v1056_v0  ;;  %v1060_v18 = vcvt.s32.f32 %v1053_v42  ;;  %1554 = vmatpush.msra.mxu0 %v3125_v54  ;;  %1656 = vmatpush.msra.mxu2 %v3078_v50 }
 0x15f   :  { %1605 = vmatpush.msra.mxu1 %v3033_v29  ;;  %1735 = vmatpush.msra.mxu3 %v3159_v11  ;;  %v2121_v11 = vld [vmem:[%s3500_s6] ss:$0 sm:$0xff] }
 0x160   :  { %v1058_v39 = vand.u32 2147483647, %v1057_v49  ;;  %1558 = vmatpush.msra.mxu0 %v3128_v13  ;;  %1658 = vmatpush.msra.mxu2 %v3083_v15 }
 0x161   :  { %1607 = vmatpush.msra.mxu1 %v3035_v48  ;;  %1741 = vmatpush.msra.mxu3 %v3178_v44  ;;  %v1065_v44 = vsel %vm942_vm12, %v1064_v25, %v3201_v33 }
 0x162   :  { %v1061_v27 = vmul.f32 %v1060_v18, %v1058_v39  ;;  %1562 = vmatpush.msra.mxu0 %v3181_v56  ;;  %1660 = vmatpush.msra.mxu2 %v3085_v16  ;;  %v1067_v42 = vsel %vm3326_vm13, 0, %v1065_v44  ;;  %v538_v44 = vmax.f32 %v2985_v62, 0.0 }
 0x163   :  { %1609 = vmatpush.msra.mxu1 %v3076_v41  ;;  %1747 = vmatpush.msra.mxu3 %v3225_v1  ;;  %v932_v1 = vadd.f32 %v2121_v11, %v2989_v57  ;;  %v1240_v57 = vadd.s32 3, %v1067_v42 }
 0x164   :  { %v1062_v17 = vxor.u32 2147483648, %v1061_v27  ;;  %1566 = vmatpush.msra.mxu0 %v3189_v47  ;;  %1662 = vmatpush.msra.mxu2 %v3143_v22 }
 0x165   :  { %1611 = vmatpush.msra.mxu1 %v3078_v50  ;;  %1753 = vmatpush.msra.mxu3 %v3230_v46  ;;  %v933_v39 = vmul.f32 1.442695, %v932_v1  ;;  %v1241_v40 = vand.u32 3, %v1240_v57 }
 0x166   :  { %v1063_v61 = vsel %vm942_vm12, %v1062_v17, %v1061_v27  ;;  %1570 = vmatpush.msra.mxu0 %v3192_v8  ;;  %1664 = vmatpush.msra.mxu2 %v3145_v37 }
 0x167   :  { %v1066_v38 = vsel %vm3326_vm13, %v2994_v34, %v1063_v61  ;;  %1613 = vmatpush.msra.mxu1 %v3083_v15  ;;  %1759 = vmatpush.msra.mxu3 %v3243_v36  ;;  %2129 = vpow2.f32 %v933_v39  ;;  %vm1242_vm1 = vcmp.lt.s32.totalorder %v1241_v40, 2  ;;  %vm1243_vm2 = vcmp.eq.s32.totalorder %v1241_v40, 0 }
 0x168   :  { %v1068_v10 = vmul.f32 %v1066_v38, %v1066_v38  ;;  %1574 = vmatpush.msra.mxu0 %v3218_v9  ;;  %1666 = vmatpush.msra.mxu2 %v3156_v2  ;;  %vm1246_vm3 = vcmp.eq.s32.totalorder %v1241_v40, 2 }
 0x169   :  { %1615 = vmatpush.msra.mxu1 %v3085_v16  ;;  %1765 = vmatpush.msra.mxu3 %v3253_v23  ;;  %v1084_v23 = vand.u32 3, %v1067_v42 }
 0x16a   :  { %v1076_v32 = vmul.f32 -0.00019511016, %v1068_v10  ;;  %v1069_v24 = vmul.f32 -0.001358992, %v1068_v10  ;;  %1578 = vmatpush.msra.mxu0 %v3221_v28  ;;  %1668 = vmatpush.msra.mxu2 %v3173_v35 }
 0x16b   :  { %1617 = vmatpush.msra.mxu1 %v3143_v22  ;;  %1771 = vmatpush.msra.mxu3 %v3267_v3  ;;  %vm1085_vm14 = vcmp.lt.s32.totalorder %v1084_v23, 2  ;;  %vm1086_vm15 = vcmp.eq.s32.totalorder %v1084_v23, 0  ;;  %vm1089_vm0 = vcmp.eq.s32.totalorder %v1084_v23, 2  ;;  %v3614_v23 = vld [vmem:[#allocation26_spill] sm:$0xff] }
 0x16c   :  { %v1077_v7 = vadd.f32 0.008332121, %v1076_v32  ;;  %v1070_v14 = vadd.f32 0.041655596, %v1069_v24  ;;  %1582 = vmatpush.msra.mxu0 %v3235_v55  ;;  %1670 = vmatpush.msra.mxu2 %v3176_v51 }
 0x16d   :  { %1619 = vmatpush.msra.mxu1 %v3145_v37  ;;  %1777 = vmatpush.msra.mxu3 %v3278_v26  ;;  %v2130_v32 = vpop.eup %2129 }
 0x16e   :  { %v1078_v33 = vmul.f32 %v1077_v7, %v1068_v10  ;;  %v1071_v0 = vmul.f32 %v1070_v14, %v1068_v10  ;;  %1586 = vmatpush.msra.mxu0 %v3258_v6  ;;  %1672 = vmatpush.msra.mxu2 %v3183_v30  ;;  %v539_v7 = vmax.f32 %v2987_v21, 0.0 }
 0x16f   :  { %1621 = vmatpush.msra.mxu1 %v3156_v2  ;;  %1783 = vmatpush.msra.mxu3 %v3286_v60 }
 0x170   :  { %v1079_v46 = vadd.f32 -0.16666654, %v1078_v33  ;;  %v1072_v49 = vadd.f32 -0.4999988, %v1071_v0  ;;  %1590 = vmatpush.msra.mxu0 %v3272_v5  ;;  %1674 = vmatpush.msra.mxu2 %v3208_v58 }
 0x171   :  { %1623 = vmatpush.msra.mxu1 %v3173_v35  ;;  %1789 = vmatpush.msra.mxu3 %v3294_v12 }
 0x172   :  { %v1080_v18 = vmul.f32 %v1079_v46, %v1068_v10  ;;  %v1073_v36 = vmul.f32 %v1072_v49, %v1068_v10  ;;  %1676 = vmatpush.msra.mxu2 %v3247_v52 }
 0x173   :  { %1625 = vmatpush.msra.mxu1 %v3176_v51 }
 0x174   :  { %v1081_v27 = vadd.f32 1.0, %v1080_v18  ;;  %v1074_v17 = vadd.f32 1.0, %v1073_v36  ;;  %v3610_v18 = vld [vmem:[#allocation23_spill] sm:$0xff]  ;;  %v3611_v36 = vld [vmem:[#allocation22_spill] sm:$0xff] }
 0x175   :  { %1627 = vmatpush.msra.mxu1 %v3183_v30 }
 0x176   :  { %v1082_v59 = vmul.f32 %v1081_v27, %v1066_v38  ;;  %v1090_v61 = vxor.u32 2147483648, %v1074_v17  ;;  %v3613_v27 = vld [vmem:[#allocation25_spill] sm:$0xff] }
 0x177   :  { %1629 = vmatpush.msra.mxu1 %v3208_v58 }
 0x178   :  { %v1087_v3 = vxor.u32 2147483648, %v1082_v59  ;;  %v1091_v25 = vsel %vm1089_vm0, %v1090_v61, %v1082_v59  ;;  %v1248_v38 = vsel %vm1246_vm3, %v1090_v61, %v1082_v59 }
 0x179   :  { %1631 = vmatpush.msra.mxu1 %v3247_v52 }
 0x17a   :  { %v1088_v26 = vsel %vm1086_vm15, %v1074_v17, %v1087_v3  ;;  %v1245_v60 = vsel %vm1243_vm2, %v1074_v17, %v1087_v3 }
 0x17b   :  { %v1092_v10 = vsel %vm1085_vm14, %v1088_v26, %v1091_v25  ;;  %v1249_v11 = vsel %vm1242_vm1, %v1245_v60, %v1248_v38 }
 0x17c   :  { %v1093_v12 = vsel %vm1083_vm4, nan, %v1092_v10  ;;  %v1250_v24 = vsel %vm1083_vm4, nan, %v1249_v11 }
 0x17d   :  { %v1094_v14 = vmul.f32 %v2130_v32, %v1093_v12  ;;  %v1251_v1 = vmul.f32 %v2130_v32, %v1250_v24 }
 0x17f   :  { %v3386_v42 = vadd.f32 %v1094_v14, %v538_v44  ;;  %v3388_v33 = vadd.f32 %v1251_v1, %v539_v7 }
 0x181   :  { %v1301_v0 = vand.u32 4294901760, %v3386_v42  ;;  %v3392_v34 = vand.u32 4294901760, %v3388_v33 }
 0x183   :  { %1415 = vmatmul.f32.vlgmr.msrb.gmra.mxu1 %v1301_v0  ;;  %v1302_v46 = vsub.f32 %v3386_v42, %v1301_v0  ;;  %v1310_v21 = vsub.f32 %v3388_v33, %v3392_v34 }
 0x184   :  { %1859 = vmatpush.msrb.mxu1 %v3008_v43 }
 0x185   :  { %1473 = vmatmul.f32.vlgmr.msrb.gmra.mxu2 %v1302_v46  ;;  %v1303_v62 = vand.u32 4294901760, %v1302_v46  ;;  %v1311_v39 = vand.u32 4294901760, %v1310_v21 }
 0x186   :  { %1861 = vmatpush.msrb.mxu1 %v3018_v19  ;;  %1906 = vmatpush.msrb.mxu2 %v3023_v63 }
 0x187   :  { %1517 = vmatmul.f32.vlgmr.msrb.gmra.mxu3 %v1303_v62  ;;  %v1304_v49 = vsub.f32 %v1302_v46, %v1303_v62  ;;  %v1312_v63 = vsub.f32 %v1310_v21, %v1311_v39 }
 0x188   :  { %1863 = vmatpush.msrb.mxu1 %v3033_v29  ;;  %1977 = vmatpush.msrb.mxu3 %v3008_v43  ;;  %v3612_v43 = vld [vmem:[#allocation24_spill] sm:$0xff] }
 0x189   :  { %v1305_v57 = vand.u32 4294901760, %v1304_v49  ;;  %1910 = vmatpush.msrb.mxu2 %v3610_v18 }
 0x18a   :  { %1865 = vmatpush.msrb.mxu1 %v3035_v48  ;;  %1979 = vmatpush.msrb.mxu3 %v3018_v19  ;;  %v1313_v19 = vand.u32 4294901760, %v1312_v63 }
 0x18b   :  { %1306 = vmatmul.f32.vlgmr.msrb.gmra.mxu0 %v1305_v57  ;;  %1419 = vmatmul.f32.gmra.mxu1 %v3392_v34 }
 0x18c   :  { %1801 = vmatpush.msrb.mxu0 %v3611_v36  ;;  %1867 = vmatpush.msrb.mxu1 %v3076_v41 }
 0x18d   :  { %1478 = vmatmul.f32.gmra.mxu2 %v1310_v21  ;;  %1981 = vmatpush.msrb.mxu3 %v3033_v29  ;;  %v3615_v29 = vld [vmem:[#allocation27_spill] sm:$0xff] }
 0x18e   :  { %1804 = vmatpush.msrb.mxu0 %v3612_v43  ;;  %1869 = vmatpush.msrb.mxu1 %v3078_v50 }
 0x18f   :  { %1523 = vmatmul.f32.gmra.mxu3 %v1311_v39  ;;  %1914 = vmatpush.msrb.mxu2 %v3071_v4  ;;  %v3616_v4 = vld [vmem:[#allocation28_spill] sm:$0xff] }
 0x190   :  { %1807 = vmatpush.msrb.mxu0 %v3613_v27  ;;  %1871 = vmatpush.msrb.mxu1 %v3083_v15 }
 0x191   :  { %1983 = vmatpush.msrb.mxu3 %v3035_v48  ;;  %1918 = vmatpush.msrb.mxu2 %v3088_v53  ;;  %v3617_v48 = vld [vmem:[#allocation29_spill] sm:$0xff]  ;;  %v3618_v53 = vld [vmem:[#allocation30_spill] sm:$0xff] }
 0x192   :  { %1810 = vmatpush.msrb.mxu0 %v3614_v23  ;;  %1873 = vmatpush.msrb.mxu1 %v3085_v16 }
 0x193   :  { %1314 = vmatmul.f32.gmra.mxu0 %v1313_v19  ;;  %1633 = vmatmul.f32.vlgmr.msra.gmra.mxu1 %v1301_v0 }
 0x194   :  { %1813 = vmatpush.msrb.mxu0 %v3615_v29  ;;  %1875 = vmatpush.msrb.mxu1 %v3143_v22 }
 0x195   :  { %1985 = vmatpush.msrb.mxu3 %v3076_v41  ;;  %1922 = vmatpush.msrb.mxu2 %v3112_v31  ;;  %v3619_v41 = vld [vmem:[#allocation31_spill] sm:$0xff]  ;;  %v3622_v31 = vld [vmem:[#allocation34_spill] sm:$0xff] }
 0x196   :  { %1816 = vmatpush.msrb.mxu0 %v3616_v4  ;;  %1877 = vmatpush.msrb.mxu1 %v3145_v37 }
 0x197   :  { %1987 = vmatpush.msrb.mxu3 %v3078_v50  ;;  %1926 = vmatpush.msrb.mxu2 %v3115_v45  ;;  %v3620_v50 = vld [vmem:[#allocation32_spill] sm:$0xff] }
 0x198   :  { %1819 = vmatpush.msrb.mxu0 %v3617_v48  ;;  %1879 = vmatpush.msrb.mxu1 %v3156_v2  ;;  %v3624_v45 = vld [vmem:[#allocation36_spill] sm:$0xff] }
 0x199   :  { %1989 = vmatpush.msrb.mxu3 %v3083_v15  ;;  %1930 = vmatpush.msrb.mxu2 %v3125_v54  ;;  %v3621_v15 = vld [vmem:[#allocation33_spill] sm:$0xff] }
 0x19a   :  { %1822 = vmatpush.msrb.mxu0 %v3618_v53  ;;  %1881 = vmatpush.msrb.mxu1 %v3173_v35  ;;  %v3625_v54 = vld [vmem:[#allocation37_spill] sm:$0xff] }
 0x19b   :  { %1592 = vmatmul.f32.vlgmr.msra.gmra.mxu0 %v1301_v0  ;;  %1637 = vmatmul.f32.gmra.mxu1 %v3392_v34 }
 0x19c   :  { %1825 = vmatpush.msrb.mxu0 %v3619_v41  ;;  %1883 = vmatpush.msrb.mxu1 %v3176_v51 }
 0x19d   :  { %1991 = vmatpush.msrb.mxu3 %v3085_v16  ;;  %1934 = vmatpush.msrb.mxu2 %v3128_v13  ;;  %v3623_v16 = vld [vmem:[#allocation35_spill] sm:$0xff] }
 0x19e   :  { %1828 = vmatpush.msrb.mxu0 %v3620_v50  ;;  %1885 = vmatpush.msrb.mxu1 %v3183_v30 }
 0x19f   :  { %1993 = vmatpush.msrb.mxu3 %v3143_v22  ;;  %1938 = vmatpush.msrb.mxu2 %v3181_v56 }
 0x1a0   :  { %1831 = vmatpush.msrb.mxu0 %v3621_v15  ;;  %1887 = vmatpush.msrb.mxu1 %v3208_v58 }
 0x1a1   :  { %1995 = vmatpush.msrb.mxu3 %v3145_v37  ;;  %1942 = vmatpush.msrb.mxu2 %v3189_v47 }
 0x1a2   :  { %1834 = vmatpush.msrb.mxu0 %v3622_v31  ;;  %1889 = vmatpush.msrb.mxu1 %v3247_v52 }
 0x1a3   :  { %1596 = vmatmul.f32.gmra.mxu0 %v3392_v34  ;;  %1997 = vmatpush.msrb.mxu3 %v3156_v2 }
 0x1a4   :  { %1837 = vmatpush.msrb.mxu0 %v3623_v16  ;;  %1946 = vmatpush.msrb.mxu2 %v3192_v8 }
 0x1a5   :  { %1999 = vmatpush.msrb.mxu3 %v3173_v35 }
 0x1a6   :  { %1840 = vmatpush.msrb.mxu0 %v3624_v45  ;;  %1950 = vmatpush.msrb.mxu2 %v3218_v9 }
 0x1a7   :  { %2001 = vmatpush.msrb.mxu3 %v3176_v51 }
 0x1a8   :  { %1843 = vmatpush.msrb.mxu0 %v3625_v54  ;;  %1954 = vmatpush.msrb.mxu2 %v3221_v28 }
 0x1a9   :  { %2003 = vmatpush.msrb.mxu3 %v3183_v30 }
 0x1aa   :  { %1846 = vmatpush.msrb.mxu0 %v3261_v20  ;;  %1958 = vmatpush.msrb.mxu2 %v3235_v55 }
 0x1ab   :  { %2005 = vmatpush.msrb.mxu3 %v3208_v58 }
 0x1ac   :  { %1962 = vmatpush.msrb.mxu2 %v3258_v6 }
 0x1ad   :  { %2007 = vmatpush.msrb.mxu3 %v3247_v52 }
 0x1ae   :  { %1966 = vmatpush.msrb.mxu2 %v3272_v5 }
 0x200   :  { %v1416_v13 = vpop.f32.mrf.mxu1 }
 0x208   :  { %v1307_v22 = vpop.f32.mrf.mxu0  ;;  %v1420_v37 = vpop.f32.mrf.mxu1 }
 0x209   :  { %v1417_v2 = vadd.f32 %v1416_v13, %v1307_v22  ;;  %v1474_v35 = vpop.f32.mrf.mxu2 }
 0x20a   :  { %v1518_v30 = vpop.f32.mrf.mxu3 }
 0x20b   :  { %v1475_v56 = vadd.f32 %v1474_v35, %v1417_v2  ;;  %v2123_v35 = vld [vmem:[%s3503_s9] ss:$0 sm:$0xff] }
 0x20d   :  { %v1519_v47 = vadd.f32 %v1518_v30, %v1475_v56 }
 0x210   :  { %v1315_v51 = vpop.f32.mrf.mxu0  ;;  %v1634_v9 = vpop.f32.mrf.mxu1 }
 0x211   :  { %v1421_v8 = vadd.f32 %v1420_v37, %v1315_v51  ;;  %v1479_v58 = vpop.f32.mrf.mxu2 }
 0x212   :  { %v1524_v5 = vpop.f32.mrf.mxu3 }
 0x213   :  { %v1480_v20 = vadd.f32 %v1479_v58, %v1421_v8 }
 0x215   :  { %v1525_v17 = vadd.f32 %v1524_v5, %v1480_v20  ;;  %v2125_v20 = vld [vmem:[%s3505_s11] ss:$0 sm:$0xff] }
 0x216   :  { %v2126_v5 = vld [vmem:[%s3506_s12] ss:$0 sm:$0xff] }
 0x218   :  { %v1593_v55 = vpop.f32.mrf.mxu0  ;;  %v1638_v26 = vpop.f32.mrf.mxu1 }
 0x219   :  { %v1594_v28 = vadd.f32 %v1593_v55, %v1519_v47  ;;  %v2124_v47 = vld [vmem:[%s3504_s10] ss:$0 sm:$0xff] }
 0x21b   :  { %v1635_v6 = vadd.f32 %v1634_v9, %v1594_v28 }
 0x21d   :  { %v3465_v52 = vsub.f32 %v3386_v42, %v1635_v6 }
 0x21f   :  { %v1643_v40 = vmul.f32 %v3465_v52, %v3465_v52 }
 0x220   :  { %v1597_v59 = vpop.f32.mrf.mxu0 }
 0x221   :  { %v1598_v61 = vadd.f32 %v1597_v59, %v1525_v17  ;;  %v1677_v3 = vand.u32 4294901760, %v1643_v40 }
 0x223   :  { %v1639_v25 = vadd.f32 %v1638_v26, %v1598_v61  ;;  %1791 = vmatmul.f32.vlgmr.msra.gmra.mxu3 %v1677_v3  ;;  %v1678_v60 = vsub.f32 %v1643_v40, %v1677_v3 }
 0x225   :  { %v3470_v38 = vsub.f32 %v3388_v33, %v1639_v25  ;;  %1849 = vmatmul.f32.vlgmr.msrb.gmra.mxu0 %v1678_v60  ;;  %v1679_v10 = vand.u32 4294901760, %v1678_v60 }
 0x227   :  { %v1644_v11 = vmul.f32 %v3470_v38, %v3470_v38  ;;  %1893 = vmatmul.f32.vlgmr.msrb.gmra.mxu1 %v1679_v10  ;;  %v1680_v32 = vsub.f32 %v1678_v60, %v1679_v10 }
 0x229   :  { %v1681_v12 = vand.u32 4294901760, %v1680_v32  ;;  %v1685_v24 = vand.u32 4294901760, %v1644_v11 }
 0x22b   :  { %1682 = vmatmul.f32.vlgmr.msra.gmra.mxu2 %v1681_v12  ;;  %1795 = vmatmul.f32.gmra.mxu3 %v1685_v24  ;;  %v1686_v44 = vsub.f32 %v1644_v11, %v1685_v24 }
 0x22d   :  { %1854 = vmatmul.f32.gmra.mxu0 %v1686_v44  ;;  %v1687_v7 = vand.u32 4294901760, %v1686_v44 }
 0x22f   :  { %1899 = vmatmul.f32.gmra.mxu1 %v1687_v7  ;;  %v1688_v14 = vsub.f32 %v1686_v44, %v1687_v7 }
 0x231   :  { %v1689_v1 = vand.u32 4294901760, %v1688_v14 }
 0x233   :  { %1690 = vmatmul.f32.gmra.mxu2 %v1689_v1  ;;  %2009 = vmatmul.f32.vlgmr.msrb.gmra.mxu3 %v1677_v3 }
 0x23b   :  { %1968 = vmatmul.f32.vlgmr.msrb.gmra.mxu2 %v1677_v3  ;;  %2013 = vmatmul.f32.gmra.mxu3 %v1685_v24 }
 0x243   :  { %1972 = vmatmul.f32.gmra.mxu2 %v1685_v24 }
 0x2a2   :  { %v1850_v62 = vpop.f32.mrf.mxu0 }
 0x2a4   :  { %v1894_v39 = vpop.f32.mrf.mxu1 }
 0x2a6   :  { %v1792_v42 = vpop.f32.mrf.mxu3 }
 0x2aa   :  { %v1855_v19 = vpop.f32.mrf.mxu0 }
 0x2ac   :  { %v1900_v4 = vpop.f32.mrf.mxu1 }
 0x2ae   :  { %v1683_v33 = vpop.f32.mrf.mxu2  ;;  %v1796_v34 = vpop.f32.mrf.mxu3 }
 0x2af   :  { %v1684_v0 = vadd.f32 1e-05, %v1683_v33 }
 0x2b1   :  { %v1793_v46 = vadd.f32 %v1792_v42, %v1684_v0 }
 0x2b3   :  { %v1851_v57 = vadd.f32 %v1850_v62, %v1793_v46 }
 0x2b5   :  { %v1895_v36 = vadd.f32 %v1894_v39, %v1851_v57 }
 0x2b6   :  { %v1691_v21 = vpop.f32.mrf.mxu2  ;;  %v2010_v63 = vpop.f32.mrf.mxu3 }
 0x2b7   :  { %v1692_v49 = vadd.f32 1e-05, %v1691_v21 }
 0x2b9   :  { %v1797_v18 = vadd.f32 %v1796_v34, %v1692_v49 }
 0x2bb   :  { %v1856_v29 = vadd.f32 %v1855_v19, %v1797_v18 }
 0x2bd   :  { %v1901_v48 = vadd.f32 %v1900_v4, %v1856_v29 }
 0x2be   :  { %v1969_v43 = vpop.f32.mrf.mxu2  ;;  %v2014_v50 = vpop.f32.mrf.mxu3 }
 0x2bf   :  { %v1970_v27 = vadd.f32 %v1969_v43, %v1895_v36 }
 0x2c1   :  { %v2011_v23 = vadd.f32 %v2010_v63, %v1970_v27 }
 0x2c3   :  { %2131 = vrsqrt.f32 %v2011_v23  ;;  %vm2023_vm6 = vweird.f32 %v2011_v23 }
 0x2c6   :  { %v1973_v53 = vpop.f32.mrf.mxu2 }
 0x2c7   :  { %v1974_v41 = vadd.f32 %v1973_v53, %v1901_v48 }
 0x2c9   :  { %v2132_v15 = vpop.eup %2131  ;;  %v2015_v31 = vadd.f32 %v2014_v50, %v1974_v41 }
 0x2ca   :  { %v2018_v16 = vmul.f32 %v2132_v15, %v2011_v23  ;;  %vm2024_vm5 = vweird.f32 %v2132_v15 }
 0x2cb   :  { %2133 = vrsqrt.f32 %v2015_v31  ;;  %vm2025_vm7 = vmor %vm2023_vm6, %vm2024_vm5  ;;  %vm2033_vm9 = vweird.f32 %v2015_v31 }
 0x2cc   :  { %v2019_v45 = vmul.f32 %v2132_v15, %v2018_v16 }
 0x2ce   :  { %v2020_v54 = vmul.f32 0.5, %v2019_v45 }
 0x2d0   :  { %v2021_v13 = vsub.f32 1.5, %v2020_v54 }
 0x2d1   :  { %v2134_v22 = vpop.eup %2133 }
 0x2d2   :  { %v2022_v37 = vmul.f32 %v2132_v15, %v2021_v13  ;;  %v2028_v2 = vmul.f32 %v2134_v22, %v2015_v31  ;;  %vm2034_vm8 = vweird.f32 %v2134_v22 }
 0x2d3   :  { %vm2035_vm10 = vmor %vm2033_vm9, %vm2034_vm8 }
 0x2d4   :  { %v2026_v51 = vsel %vm2025_vm7, %v2132_v15, %v2022_v37  ;;  %v2029_v56 = vmul.f32 %v2134_v22, %v2028_v2 }
 0x2d5   :  { %v2037_v30 = vmul.f32 %v2026_v51, %v3465_v52 }
 0x2d6   :  { %v2030_v8 = vmul.f32 0.5, %v2029_v56 }
 0x2d7   :  { %v2043_v9 = vmul.f32 %v2123_v35, %v2037_v30 }
 0x2d8   :  { %v2031_v55 = vsub.f32 1.5, %v2030_v8 }
 0x2d9   :  { %v2048_v28 = vadd.f32 %v2124_v47, %v2043_v9 }
 0x2da   :  { %v2032_v58 = vmul.f32 %v2134_v22, %v2031_v55 }
 0x2db   :  { %2059 = vst [vmem:[#allocation13] sm:$0xff] %v2048_v28 }
 0x2dc   :  { %v2036_v6 = vsel %vm2035_vm10, %v2134_v22, %v2032_v58  ;;  %2071 = dma.vmem_to_hbm [thread:$0]  %s2067_s30, 128, %s2069_s16, [#allocation4]  }
 0x2dd   :  { %v2038_v52 = vmul.f32 %v2036_v6, %v3470_v38 }
 0x2df   :  { %v2053_v17 = vmul.f32 %v2125_v20, %v2038_v52 }
 0x2e1   :  { %v2058_v40 = vadd.f32 %v2126_v5, %v2053_v17 }
 0x2e3   :  { %2060 = vst [vmem:[#allocation14] sm:$0xff] %v2058_v40 }
 0x2e4   :  { %2082 = dma.vmem_to_hbm [thread:$0]  %s2078_s19, 128, %s2080_s21, [#allocation15]  }
 0x2e5   :  { %2335 = dma.done.wait [#allocation4], 128  }
 0x2e6   :  { %2336 = vsyncadd [#allocation4], 4294967168 }
 0x2e7   :  { %2337 = dma.done.wait [#allocation15], 128  }
 0x2e8   :  { %2338 = vsyncadd [#allocation15], 4294967168 }
 0x2e9   :  { %2091 = vsyncpa [#allocation3], 1 }
 0x2ea   :  { %2092 = vsyncpa [#allocation6], 1 }
 0x2eb   :  { %2093 = vsyncpa [#allocation9], 1 }
 0x2ec   :  { %2094 = vsyncpa [#allocation12], 1 }
 0x2ed   :  { %2095 = vsyncpa [#allocation4], 1 }
 0x2ee   :  { %2096 = vsyncpa [#allocation15], 1 }

</bundles_post_ra>
